<compile_context>
chip_gen: v5e
topology: v5e:2x2
jax: 0.10.0
libtpu: 0.0.40
codegen_flags: <defaults>
</compile_context>

<pallas_src>
import functools

import jax
import jax.numpy as jnp
from jax.experimental import pallas as pl
from jax.experimental.pallas import tpu as pltpu


# ----------------------------------------------------------------------------
# Pallas kernels
# ----------------------------------------------------------------------------
def _conv_relu_t_kernel(p_ref, w_ref, o_ref):
    """out^T = relu(W^T @ patches^T).  f32 MXU accumulation, lane-dense store."""
    acc = jnp.dot(w_ref[...], p_ref[...], preferred_element_type=jnp.float32)
    o_ref[...] = jnp.maximum(acc, 0.0).astype(o_ref.dtype)


def _conv_relu_conv_sigmoid_kernel(p_ref, w4_ref, w5_ref, o_ref, *, n_batch, npos):
    """Fused layers 4+5: relu(W4^T @ patches4^T) followed by the 4x4/stride-1
    (Cout=1) conv + sigmoid.  Layer-4's output never leaves VMEM/vregs; only the
    (N, 1) probabilities are stored."""
    w4 = w4_ref[...]                                  # (C4, K4)
    w5 = w5_ref[...].astype(jnp.float32)              # (C4, npos)
    p = p_ref[...]                                    # (K4, n_batch * npos)
    for n in range(n_batch):                          # static unroll (tiny batch)
        pn = p[:, n * npos:(n + 1) * npos]            # (K4, npos)
        y4 = jnp.dot(w4, pn, preferred_element_type=jnp.float32)   # (C4, npos)
        y4 = jnp.maximum(y4, 0.0)
        s = jnp.sum(y4 * w5, axis=1, keepdims=True)   # (C4, 1)
        s = jnp.sum(s, axis=0, keepdims=True)         # (1, 1)
        o_ref[n:n + 1, :] = jax.nn.sigmoid(s)


# ----------------------------------------------------------------------------
# pallas_call wrappers (single grid step, full-extent blocks, lane-dense out)
# ----------------------------------------------------------------------------
def conv_relu_t(patches_t, w_t):
    """relu(w_t @ patches_t); patches_t: (K, M), w_t: (Cout, K) -> (Cout, M)."""
    k, m = patches_t.shape
    cout = w_t.shape[0]
    isz = patches_t.dtype.itemsize
    cost = pl.CostEstimate(
        flops=2 * cout * k * m,
        transcendentals=0,
        bytes_accessed=(k * m + cout * k) * isz + cout * m * isz)
    return pl.pallas_call(
        _conv_relu_t_kernel,
        out_shape=jax.ShapeDtypeStruct((cout, m), patches_t.dtype),
        grid=(1,),
        in_specs=[pl.BlockSpec((k, m), lambda i: (0, 0)),
                  pl.BlockSpec((cout, k), lambda i: (0, 0))],
        out_specs=pl.BlockSpec((cout, m), lambda i: (0, 0)),
        compiler_params=pltpu.CompilerParams(
            dimension_semantics=("arbitrary",),
            allow_input_fusion=[True, True]),
        cost_estimate=cost,
    )(patches_t, w_t)


def conv_final_fused(patches_t, w4_t, w5_t, n_batch, npos):
    """Fused conv4+ReLU+conv5+Sigmoid -> (N, 1) probabilities (f32)."""
    k4, m4 = patches_t.shape
    c4 = w4_t.shape[0]
    isz = patches_t.dtype.itemsize
    cost = pl.CostEstimate(
        flops=2 * c4 * k4 * m4 + 2 * c4 * npos * n_batch,
        transcendentals=n_batch,
        bytes_accessed=(k4 * m4 + c4 * k4 + c4 * npos) * isz + n_batch * 4)
    return pl.pallas_call(
        functools.partial(_conv_relu_conv_sigmoid_kernel,
                          n_batch=n_batch, npos=npos),
        out_shape=jax.ShapeDtypeStruct((n_batch, 1), jnp.float32),
        grid=(1,),
        in_specs=[pl.BlockSpec((k4, m4), lambda i: (0, 0)),
                  pl.BlockSpec((c4, k4), lambda i: (0, 0)),
                  pl.BlockSpec((c4, npos), lambda i: (0, 0))],
        out_specs=pl.BlockSpec((n_batch, 1), lambda i: (0, 0)),
        compiler_params=pltpu.CompilerParams(
            dimension_semantics=("arbitrary",),
            allow_input_fusion=[True, True, True]),
        cost_estimate=cost,
    )(patches_t, w4_t, w5_t)


# ----------------------------------------------------------------------------
# Channel-major im2col glue (XLA slicing / concat only -- see TODO(synk))
# ----------------------------------------------------------------------------
def _patches_t(xc, stride, pad):
    """xc: (C, N, H, W) channel-major -> (16*C, N*Ho*Wo) transposed patches.
    Row ordering (i*4 + j)*C + c matches the packed (Cout, 16*Cin) weights;
    column ordering is (n, ho, wo) row-major."""
    c, n, _, _ = xc.shape
    if pad:
        xc = jnp.pad(xc, ((0, 0), (0, 0), (pad, pad), (pad, pad)))
    hp, wp = xc.shape[2], xc.shape[3]
    ho = (hp - 4) // stride + 1
    wo = (wp - 4) // stride + 1
    taps = [
        xc[:, :, i:i + stride * (ho - 1) + 1:stride,
              j:j + stride * (wo - 1) + 1:stride].reshape(c, n * ho * wo)
        for i in range(4) for j in range(4)
    ]
    return jnp.concatenate(taps, axis=0), ho, wo


# ----------------------------------------------------------------------------
# Parameters: PyTorch layout init + one-time packing (outside jit)
# ----------------------------------------------------------------------------
def init_params(key, in_channel, hidden_channel):
    """Deterministic synthetic weights, PyTorch Conv2d layout (Cout, Cin, kh, kw)."""
    shapes = [
        (hidden_channel, in_channel, 4, 4),
        (hidden_channel * 2, hidden_channel, 4, 4),
        (hidden_channel * 4, hidden_channel * 2, 4, 4),
        (hidden_channel * 8, hidden_channel * 4, 4, 4),
        (1, hidden_channel * 8, 4, 4),
    ]
    keys = jax.random.split(key, len(shapes))
    return [0.05 * jax.random.normal(k, s, dtype=jnp.float32)
            for k, s in zip(keys, shapes)]


def pack_params(params, compute_dtype):
    """Pre-pack conv weights once:
      layers 1-4: (Cout, Cin, 4, 4) -> (Cout, 16*Cin), K index (i*4+j)*Cin + c
      layer 5:    (1, C4, 4, 4)     -> (C4, 16),       pos index i*4 + j"""
    packed = []
    for w in params[:4]:
        cout, cin = w.shape[0], w.shape[1]
        packed.append(jnp.transpose(w, (0, 2, 3, 1))
                      .reshape(cout, 16 * cin).astype(compute_dtype))
    packed.append(params[4][0].reshape(params[4].shape[1], 16).astype(compute_dtype))
    return packed


# ----------------------------------------------------------------------------
# b_Discriminator forward
# ----------------------------------------------------------------------------
def b_discriminator_forward(x_nchw, packed):
    """nn.Sequential(Conv(4,2,1)-ReLU x4, Conv(4,1,0), Sigmoid).  NCHW in,
    (N, 1, 1, 1) out.  Compute dtype follows the packed weights."""
    w1, w2, w3, w4, w5 = packed
    n = x_nchw.shape[0]
    xc = jnp.transpose(x_nchw, (1, 0, 2, 3)).astype(w1.dtype)   # (C, N, H, W)
    for w in (w1, w2, w3):                                       # layers 1-3
        p, ho, wo = _patches_t(xc, 2, 1)
        y = conv_relu_t(p, w)                                    # (Cout, N*ho*wo)
        xc = y.reshape(w.shape[0], n, ho, wo)
    p4, ho4, wo4 = _patches_t(xc, 2, 1)                          # layer-4 patches
    assert ho4 == 4 and wo4 == 4, "final 4x4 valid conv expects a 4x4 map (64x64 input)"
    out = conv_final_fused(p4, w4, w5, n, ho4 * wo4)             # (N, 1) f32
    return out.reshape(n, 1, 1, 1)


# ----------------------------------------------------------------------------
# Pure-JAX reference (lax convs) for correctness checks
# ----------------------------------------------------------------------------
def _reference_forward(x_nchw, params):
    x = jnp.transpose(x_nchw, (0, 2, 3, 1))
    cfg = [(2, 1, "relu")] * 4 + [(1, 0, "sigmoid")]
    for w, (stride, pad, act) in zip(params, cfg):
        w_hwio = jnp.transpose(w, (2, 3, 1, 0))
        x = jax.lax.conv_general_dilated(
            x, w_hwio,
            window_strides=(stride, stride),
            padding=[(pad, pad), (pad, pad)],
            dimension_numbers=("NHWC", "HWIO", "NHWC"))
        x = jnp.maximum(x, 0.0) if act == "relu" else jax.nn.sigmoid(x)
    return jnp.transpose(x, (0, 3, 1, 2))


if __name__ == "__main__":
    # DCGAN-consistent shapes: 64x64 input so the final 4x4/stride-1/pad-0 conv
    # produces the (N, 1, 1, 1) probability the module implies.
    batch, in_channel, hidden_channel, spatial = 2, 3, 8, 64

    key = jax.random.PRNGKey(0)
    kx, kw = jax.random.split(key)
    x = jax.random.normal(kx, (batch, in_channel, spatial, spatial), dtype=jnp.float32)
    params = init_params(kw, in_channel, hidden_channel)

    # Weights packed ONCE, outside jit (review: hoist transpose/reshape/cast).
    packed_bf16 = pack_params(params, jnp.bfloat16)   # performance path
    packed_f32 = pack_params(params, jnp.float32)     # tight-check path

    fwd = jax.jit(b_discriminator_forward)

    out = jax.block_until_ready(fwd(x, packed_bf16))
    assert out.shape == (batch, 1, 1, 1), out.shape

    ref = jax.block_until_ready(_reference_forward(x, params))

    # Structural correctness: f32 Pallas path vs lax.conv reference (tight).
    out_f32 = jax.block_until_ready(fwd(x, packed_f32))
    assert jnp.allclose(out_f32, ref, atol=2e-4, rtol=2e-4), (
        float(jnp.max(jnp.abs(out_f32 - ref))))

    # bf16-MXU path: f32 accumulation, sigmoid outputs stay within 1e-2.
    assert jnp.allclose(out, ref, atol=1e-2, rtol=0.0), (
        float(jnp.max(jnp.abs(out - ref))))

    print("KERNEL_OK")
</pallas_src>

<mosaic_0001>
module attributes {stable_mosaic.version = 11 : i64} {
  func.func @_conv_relu_t_kernel(%arg0: i32, %arg1: memref<48x2048xbf16, #tpu.memory_space<vmem>>, %arg2: memref<8x48xbf16, #tpu.memory_space<vmem>>, %arg3: memref<8x2048xbf16, #tpu.memory_space<vmem>>) attributes {dimension_semantics = [#tpu.dimension_semantics<arbitrary>], iteration_bounds = array<i64: 1>, scalar_prefetch = 0 : i64, scratch_operands = 0 : i64, tpu.core_type = #tpu.core_type<tc>, window_params = [{pipeline_mode = #tpu.pipeline_mode<synchronous>, transform_indices = @transform_0, window_bounds = array<i64: 48, 2048>}, {pipeline_mode = #tpu.pipeline_mode<synchronous>, transform_indices = @transform_1, window_bounds = array<i64: 8, 48>}, {pipeline_mode = #tpu.pipeline_mode<synchronous>, transform_indices = @transform_2, window_bounds = array<i64: 8, 2048>}]} {
    %c0 = arith.constant 0 : index
    %c0_0 = arith.constant 0 : index
    %0 = vector.load %arg2[%c0, %c0_0] : memref<8x48xbf16, #tpu.memory_space<vmem>>, vector<8x48xbf16>
    %c0_1 = arith.constant 0 : index
    %c0_2 = arith.constant 0 : index
    %1 = vector.load %arg1[%c0_1, %c0_2] : memref<48x2048xbf16, #tpu.memory_space<vmem>>, vector<48x2048xbf16>
    %cst = arith.constant dense<0.000000e+00> : vector<8x2048xf32>
    %2 = tpu.matmul %0, %1, %cst {dimension_numbers = #tpu.dot_dimension_numbers<[1], [0], [0], [1], [0, 0, 1, 1], [], []>} : vector<8x48xbf16>, vector<48x2048xbf16>, vector<8x2048xf32> -> vector<8x2048xf32>
    %cst_3 = arith.constant 0.000000e+00 : f32
    %3 = vector.broadcast %cst_3 : f32 to vector<8x2048xf32>
    %4 = arith.maximumf %2, %3 : vector<8x2048xf32>
    %5 = arith.truncf %4 : vector<8x2048xf32> to vector<8x2048xbf16>
    %c0_4 = arith.constant 0 : index
    %c0_5 = arith.constant 0 : index
    %6 = vector.load %arg3[%c0_4, %c0_5] : memref<8x2048xbf16, #tpu.memory_space<vmem>>, vector<8x2048xbf16>
    tpu.vector_store %arg3[%c0_4, %c0_5], %5 {strides = array<i32>} : memref<8x2048xbf16, #tpu.memory_space<vmem>>, vector<8x2048xbf16>,
    return
  }
  func.func @transform_0(%arg0: i32) -> (i32, i32) {
    %c0_i32 = arith.constant 0 : i32
    %c0_i32_0 = arith.constant 0 : i32
    %c0_i32_1 = arith.constant 0 : i32
    return %c0_i32, %c0_i32_0 : i32, i32
  }
  func.func @transform_1(%arg0: i32) -> (i32, i32) {
    %c0_i32 = arith.constant 0 : i32
    %c0_i32_0 = arith.constant 0 : i32
    %c0_i32_1 = arith.constant 0 : i32
    return %c0_i32, %c0_i32_0 : i32, i32
  }
  func.func @transform_2(%arg0: i32) -> (i32, i32) {
    %c0_i32 = arith.constant 0 : i32
    %c0_i32_0 = arith.constant 0 : i32
    %c0_i32_1 = arith.constant 0 : i32
    return %c0_i32, %c0_i32_0 : i32, i32
  }
}

module attributes {stable_mosaic.version = 11 : i64} {
  func.func @_conv_relu_t_kernel(%arg0: i32, %arg1: memref<128x512xbf16, #tpu.memory_space<vmem>>, %arg2: memref<16x128xbf16, #tpu.memory_space<vmem>>, %arg3: memref<16x512xbf16, #tpu.memory_space<vmem>>) attributes {dimension_semantics = [#tpu.dimension_semantics<arbitrary>], iteration_bounds = array<i64: 1>, scalar_prefetch = 0 : i64, scratch_operands = 0 : i64, tpu.core_type = #tpu.core_type<tc>, window_params = [{pipeline_mode = #tpu.pipeline_mode<synchronous>, transform_indices = @transform_0, window_bounds = array<i64: 128, 512>}, {pipeline_mode = #tpu.pipeline_mode<synchronous>, transform_indices = @transform_1, window_bounds = array<i64: 16, 128>}, {pipeline_mode = #tpu.pipeline_mode<synchronous>, transform_indices = @transform_2, window_bounds = array<i64: 16, 512>}]} {
    %c0 = arith.constant 0 : index
    %c0_0 = arith.constant 0 : index
    %0 = vector.load %arg2[%c0, %c0_0] : memref<16x128xbf16, #tpu.memory_space<vmem>>, vector<16x128xbf16>
    %c0_1 = arith.constant 0 : index
    %c0_2 = arith.constant 0 : index
    %1 = vector.load %arg1[%c0_1, %c0_2] : memref<128x512xbf16, #tpu.memory_space<vmem>>, vector<128x512xbf16>
    %cst = arith.constant dense<0.000000e+00> : vector<16x512xf32>
    %2 = tpu.matmul %0, %1, %cst {dimension_numbers = #tpu.dot_dimension_numbers<[1], [0], [0], [1], [0, 0, 1, 1], [], []>} : vector<16x128xbf16>, vector<128x512xbf16>, vector<16x512xf32> -> vector<16x512xf32>
    %cst_3 = arith.constant 0.000000e+00 : f32
    %3 = vector.broadcast %cst_3 : f32 to vector<16x512xf32>
    %4 = arith.maximumf %2, %3 : vector<16x512xf32>
    %5 = arith.truncf %4 : vector<16x512xf32> to vector<16x512xbf16>
    %c0_4 = arith.constant 0 : index
    %c0_5 = arith.constant 0 : index
    %6 = vector.load %arg3[%c0_4, %c0_5] : memref<16x512xbf16, #tpu.memory_space<vmem>>, vector<16x512xbf16>
    tpu.vector_store %arg3[%c0_4, %c0_5], %5 {strides = array<i32>} : memref<16x512xbf16, #tpu.memory_space<vmem>>, vector<16x512xbf16>,
    return
  }
  func.func @transform_0(%arg0: i32) -> (i32, i32) {
    %c0_i32 = arith.constant 0 : i32
    %c0_i32_0 = arith.constant 0 : i32
    %c0_i32_1 = arith.constant 0 : i32
    return %c0_i32, %c0_i32_0 : i32, i32
  }
  func.func @transform_1(%arg0: i32) -> (i32, i32) {
    %c0_i32 = arith.constant 0 : i32
    %c0_i32_0 = arith.constant 0 : i32
    %c0_i32_1 = arith.constant 0 : i32
    return %c0_i32, %c0_i32_0 : i32, i32
  }
  func.func @transform_2(%arg0: i32) -> (i32, i32) {
    %c0_i32 = arith.constant 0 : i32
    %c0_i32_0 = arith.constant 0 : i32
    %c0_i32_1 = arith.constant 0 : i32
    return %c0_i32, %c0_i32_0 : i32, i32
  }
}

module attributes {stable_mosaic.version = 11 : i64} {
  func.func @_conv_relu_t_kernel(%arg0: i32, %arg1: memref<256x128xbf16, #tpu.memory_space<vmem>>, %arg2: memref<32x256xbf16, #tpu.memory_space<vmem>>, %arg3: memref<32x128xbf16, #tpu.memory_space<vmem>>) attributes {dimension_semantics = [#tpu.dimension_semantics<arbitrary>], iteration_bounds = array<i64: 1>, scalar_prefetch = 0 : i64, scratch_operands = 0 : i64, tpu.core_type = #tpu.core_type<tc>, window_params = [{pipeline_mode = #tpu.pipeline_mode<synchronous>, transform_indices = @transform_0, window_bounds = array<i64: 256, 128>}, {pipeline_mode = #tpu.pipeline_mode<synchronous>, transform_indices = @transform_1, window_bounds = array<i64: 32, 256>}, {pipeline_mode = #tpu.pipeline_mode<synchronous>, transform_indices = @transform_2, window_bounds = array<i64: 32, 128>}]} {
    %c0 = arith.constant 0 : index
    %c0_0 = arith.constant 0 : index
    %0 = vector.load %arg2[%c0, %c0_0] : memref<32x256xbf16, #tpu.memory_space<vmem>>, vector<32x256xbf16>
    %c0_1 = arith.constant 0 : index
    %c0_2 = arith.constant 0 : index
    %1 = vector.load %arg1[%c0_1, %c0_2] : memref<256x128xbf16, #tpu.memory_space<vmem>>, vector<256x128xbf16>
    %cst = arith.constant dense<0.000000e+00> : vector<32x128xf32>
    %2 = tpu.matmul %0, %1, %cst {dimension_numbers = #tpu.dot_dimension_numbers<[1], [0], [0], [1], [0, 0, 1, 1], [], []>} : vector<32x256xbf16>, vector<256x128xbf16>, vector<32x128xf32> -> vector<32x128xf32>
    %cst_3 = arith.constant 0.000000e+00 : f32
    %3 = vector.broadcast %cst_3 : f32 to vector<32x128xf32>
    %4 = arith.maximumf %2, %3 : vector<32x128xf32>
    %5 = arith.truncf %4 : vector<32x128xf32> to vector<32x128xbf16>
    %c0_4 = arith.constant 0 : index
    %c0_5 = arith.constant 0 : index
    %6 = vector.load %arg3[%c0_4, %c0_5] : memref<32x128xbf16, #tpu.memory_space<vmem>>, vector<32x128xbf16>
    tpu.vector_store %arg3[%c0_4, %c0_5], %5 {strides = array<i32>} : memref<32x128xbf16, #tpu.memory_space<vmem>>, vector<32x128xbf16>,
    return
  }
  func.func @transform_0(%arg0: i32) -> (i32, i32) {
    %c0_i32 = arith.constant 0 : i32
    %c0_i32_0 = arith.constant 0 : i32
    %c0_i32_1 = arith.constant 0 : i32
    return %c0_i32, %c0_i32_0 : i32, i32
  }
  func.func @transform_1(%arg0: i32) -> (i32, i32) {
    %c0_i32 = arith.constant 0 : i32
    %c0_i32_0 = arith.constant 0 : i32
    %c0_i32_1 = arith.constant 0 : i32
    return %c0_i32, %c0_i32_0 : i32, i32
  }
  func.func @transform_2(%arg0: i32) -> (i32, i32) {
    %c0_i32 = arith.constant 0 : i32
    %c0_i32_0 = arith.constant 0 : i32
    %c0_i32_1 = arith.constant 0 : i32
    return %c0_i32, %c0_i32_0 : i32, i32
  }
}

module attributes {stable_mosaic.version = 11 : i64} {
  func.func @_conv_relu_conv_sigmoid_kernel(%arg0: i32, %arg1: memref<512x32xbf16, #tpu.memory_space<vmem>>, %arg2: memref<64x512xbf16, #tpu.memory_space<vmem>>, %arg3: memref<64x16xbf16, #tpu.memory_space<vmem>>, %arg4: memref<2x1xf32, #tpu.memory_space<vmem>>) attributes {dimension_semantics = [#tpu.dimension_semantics<arbitrary>], iteration_bounds = array<i64: 1>, scalar_prefetch = 0 : i64, scratch_operands = 0 : i64, tpu.core_type = #tpu.core_type<tc>, window_params = [{pipeline_mode = #tpu.pipeline_mode<synchronous>, transform_indices = @transform_0, window_bounds = array<i64: 512, 32>}, {pipeline_mode = #tpu.pipeline_mode<synchronous>, transform_indices = @transform_1, window_bounds = array<i64: 64, 512>}, {pipeline_mode = #tpu.pipeline_mode<synchronous>, transform_indices = @transform_2, window_bounds = array<i64: 64, 16>}, {pipeline_mode = #tpu.pipeline_mode<synchronous>, transform_indices = @transform_3, window_bounds = array<i64: 2, 1>}]} {
    %c0 = arith.constant 0 : index
    %c0_0 = arith.constant 0 : index
    %0 = vector.load %arg2[%c0, %c0_0] : memref<64x512xbf16, #tpu.memory_space<vmem>>, vector<64x512xbf16>
    %c0_1 = arith.constant 0 : index
    %c0_2 = arith.constant 0 : index
    %1 = vector.load %arg3[%c0_1, %c0_2] : memref<64x16xbf16, #tpu.memory_space<vmem>>, vector<64x16xbf16>
    %2 = arith.extf %1 : vector<64x16xbf16> to vector<64x16xf32>
    %c0_3 = arith.constant 0 : index
    %c0_4 = arith.constant 0 : index
    %3 = vector.load %arg1[%c0_3, %c0_4] : memref<512x32xbf16, #tpu.memory_space<vmem>>, vector<512x32xbf16>
    %4 = vector.extract_strided_slice %3 {offsets = [0, 0], sizes = [512, 16], strides = [1, 1]} : vector<512x32xbf16> to vector<512x16xbf16>
    %cst = arith.constant dense<0.000000e+00> : vector<64x16xf32>
    %5 = tpu.matmul %0, %4, %cst {dimension_numbers = #tpu.dot_dimension_numbers<[1], [0], [0], [1], [0, 0, 1, 1], [], []>} : vector<64x512xbf16>, vector<512x16xbf16>, vector<64x16xf32> -> vector<64x16xf32>
    %cst_5 = arith.constant 0.000000e+00 : f32
    %6 = vector.broadcast %cst_5 : f32 to vector<64x16xf32>
    %7 = arith.maximumf %5, %6 : vector<64x16xf32>
    %8 = arith.mulf %7, %2 : vector<64x16xf32>
    %cst_6 = arith.constant dense<0.000000e+00> : vector<64xf32>
    %9 = vector.multi_reduction <add>, %8, %cst_6 [1] : vector<64x16xf32> to vector<64xf32>
    %10 = vector.shape_cast %9 : vector<64xf32> to vector<64x1xf32>
    %cst_7 = arith.constant dense<0.000000e+00> : vector<1xf32>
    %11 = vector.multi_reduction <add>, %10, %cst_7 [0] : vector<64x1xf32> to vector<1xf32>
    %12 = vector.shape_cast %11 : vector<1xf32> to vector<1x1xf32>
    %13 = arith.negf %12 : vector<1x1xf32>
    %14 = math.exp %13 : vector<1x1xf32>
    %cst_8 = arith.constant 1.000000e+00 : f32
    %15 = vector.broadcast %cst_8 : f32 to vector<1x1xf32>
    %16 = arith.addf %15, %14 : vector<1x1xf32>
    %17 = arith.divf %15, %16 : vector<1x1xf32>
    %c0_9 = arith.constant 0 : index
    %c0_10 = arith.constant 0 : index
    %18 = vector.load %arg4[%c0_9, %c0_10] : memref<2x1xf32, #tpu.memory_space<vmem>>, vector<1x1xf32>
    tpu.vector_store %arg4[%c0_9, %c0_10], %17 {strides = array<i32>} : memref<2x1xf32, #tpu.memory_space<vmem>>, vector<1x1xf32>,
    %19 = vector.extract_strided_slice %3 {offsets = [0, 16], sizes = [512, 16], strides = [1, 1]} : vector<512x32xbf16> to vector<512x16xbf16>
    %cst_11 = arith.constant dense<0.000000e+00> : vector<64x16xf32>
    %20 = tpu.matmul %0, %19, %cst_11 {dimension_numbers = #tpu.dot_dimension_numbers<[1], [0], [0], [1], [0, 0, 1, 1], [], []>} : vector<64x512xbf16>, vector<512x16xbf16>, vector<64x16xf32> -> vector<64x16xf32>
    %cst_12 = arith.constant 0.000000e+00 : f32
    %21 = vector.broadcast %cst_12 : f32 to vector<64x16xf32>
    %22 = arith.maximumf %20, %21 : vector<64x16xf32>
    %23 = arith.mulf %22, %2 : vector<64x16xf32>
    %cst_13 = arith.constant dense<0.000000e+00> : vector<64xf32>
    %24 = vector.multi_reduction <add>, %23, %cst_13 [1] : vector<64x16xf32> to vector<64xf32>
    %25 = vector.shape_cast %24 : vector<64xf32> to vector<64x1xf32>
    %cst_14 = arith.constant dense<0.000000e+00> : vector<1xf32>
    %26 = vector.multi_reduction <add>, %25, %cst_14 [0] : vector<64x1xf32> to vector<1xf32>
    %27 = vector.shape_cast %26 : vector<1xf32> to vector<1x1xf32>
    %28 = arith.negf %27 : vector<1x1xf32>
    %29 = math.exp %28 : vector<1x1xf32>
    %cst_15 = arith.constant 1.000000e+00 : f32
    %30 = vector.broadcast %cst_15 : f32 to vector<1x1xf32>
    %31 = arith.addf %30, %29 : vector<1x1xf32>
    %32 = arith.divf %30, %31 : vector<1x1xf32>
    %c1 = arith.constant 1 : index
    %c0_16 = arith.constant 0 : index
    %33 = vector.load %arg4[%c1, %c0_16] : memref<2x1xf32, #tpu.memory_space<vmem>>, vector<1x1xf32>
    tpu.vector_store %arg4[%c1, %c0_16], %32 {strides = array<i32>} : memref<2x1xf32, #tpu.memory_space<vmem>>, vector<1x1xf32>,
    return
  }
  func.func @transform_0(%arg0: i32) -> (i32, i32) {
    %c0_i32 = arith.constant 0 : i32
    %c0_i32_0 = arith.constant 0 : i32
    %c0_i32_1 = arith.constant 0 : i32
    return %c0_i32, %c0_i32_0 : i32, i32
  }
  func.func @transform_1(%arg0: i32) -> (i32, i32) {
    %c0_i32 = arith.constant 0 : i32
    %c0_i32_0 = arith.constant 0 : i32
    %c0_i32_1 = arith.constant 0 : i32
    return %c0_i32, %c0_i32_0 : i32, i32
  }
  func.func @transform_2(%arg0: i32) -> (i32, i32) {
    %c0_i32 = arith.constant 0 : i32
    %c0_i32_0 = arith.constant 0 : i32
    %c0_i32_1 = arith.constant 0 : i32
    return %c0_i32, %c0_i32_0 : i32, i32
  }
  func.func @transform_3(%arg0: i32) -> (i32, i32) {
    %c0_i32 = arith.constant 0 : i32
    %c0_i32_0 = arith.constant 0 : i32
    %c0_i32_1 = arith.constant 0 : i32
    return %c0_i32, %c0_i32_0 : i32, i32
  }
}

</mosaic_0001>

<bundles_post_ra>
// kernel: b_discriminator_forward.4
= control target key start
LH: loop header
LB: loop body
LE: loop exit
PB: predicated region body
PF: predicated region fallthrough
CT: control target
= control target key end

     0   :  { %vm301_vm0 = vcmask 392192   ;;  %s1169_s0 = inlined_call_operand.vmem [shape: bf16[48,2048], index: 0, kind: input, shape index: {}]   ;;  %s1170_s1 = inlined_call_operand.vmem [shape: bf16[8,48], index: 1, kind: input, shape index: {}]   ;;  %s1171_s2 = inlined_call_operand.vmem [shape: bf16[8,2048], index: 2, kind: output, shape index: {}]  }
   0x1   :  { %v679_v0 = vld [vmem:[%s1169_s0 + $0x100] sm:$0xf]  ;;  %v789_v2 = vld [vmem:[%s1169_s0 + $0x104] sm:$0xf]  ;;  %v687_v5 = vld [vmem:[%s1169_s0 + $0x108] sm:$0xf] }
   0x2   :  { %v797_v1 = vld [vmem:[%s1169_s0 + $0x13c] sm:$0xf0]  ;;  %v681_v4 = vld [vmem:[%s1169_s0 + $0x140] sm:$0xf0]  ;;  %v798_v6 = vld [vmem:[%s1169_s0 + $0x144] sm:$0xf0] }
   0x3   :  { %v680_v3 = vor.u32 %v797_v1, %v679_v0  ;;  %v684_v7 = vor.u32 %v789_v2, %v681_v4  ;;  %v688_v8 = vor.u32 %v798_v6, %v687_v5  ;;  %v790_v9 = vld [vmem:[%s1169_s0 + $0x10c] sm:$0xf]  ;;  %v615_v11 = vld [vmem:[%s1169_s0 + $0x80] sm:$0xf]  ;;  %v773_v14 = vld [vmem:[%s1169_s0 + $0x84] sm:$0xf] }
   0x4   :  { %v689_v10 = vld [vmem:[%s1169_s0 + $0x148] sm:$0xf0]  ;;  %v781_v13 = vld [vmem:[%s1169_s0 + $0xbc] sm:$0xf0]  ;;  %v617_v15 = vld [vmem:[%s1169_s0 + $0xc0] sm:$0xf0] }
   0x5   :  { %310 = vmatpush.bf16.msra.mxu0 %v680_v3  ;;  %v692_v12 = vor.u32 %v790_v9, %v689_v10  ;;  %323 = vmatpush.bf16.msra.mxu1 %v684_v7  ;;  %v616_v16 = vor.u32 %v781_v13, %v615_v11  ;;  %v620_v17 = vor.u32 %v773_v14, %v617_v15  ;;  %v623_v18 = vld [vmem:[%s1169_s0 + $0x88] sm:$0xf]  ;;  %v774_v20 = vld [vmem:[%s1169_s0 + $0x8c] sm:$0xf]  ;;  %v551_v23 = vld [vmem:[%s1169_s0] sm:$0xf] }
   0x6   :  { %336 = vmatpush.bf16.msra.mxu2 %v688_v8  ;;  %v782_v19 = vld [vmem:[%s1169_s0 + $0xc4] sm:$0xf0]  ;;  %v625_v22 = vld [vmem:[%s1169_s0 + $0xc8] sm:$0xf0]  ;;  %v765_v24 = vld [vmem:[%s1169_s0 + $0x3c] sm:$0xf0] }
   0x7   :  { %349 = vmatpush.bf16.msra.mxu3 %v692_v12  ;;  %v624_v21 = vor.u32 %v782_v19, %v623_v18  ;;  %v628_v25 = vor.u32 %v774_v20, %v625_v22  ;;  %v757_v26 = vld [vmem:[%s1169_s0 + $0x4] sm:$0xf]  ;;  %v559_v28 = vld [vmem:[%s1169_s0 + $0x8] sm:$0xf]  ;;  %v552_v29 = vor.u32 %v765_v24, %v551_v23  ;;  %v758_v31 = vld [vmem:[%s1169_s0 + $0xc] sm:$0xf] }
   0x8   :  { %v553_v27 = vld [vmem:[%s1169_s0 + $0x40] sm:$0xf0]  ;;  %v766_v30 = vld [vmem:[%s1169_s0 + $0x44] sm:$0xf0]  ;;  %v561_v32 = vld [vmem:[%s1169_s0 + $0x48] sm:$0xf0] }
   0x9   :  { %311 = vmatpush.bf16.msra.mxu0 %v616_v16  ;;  %324 = vmatpush.bf16.msra.mxu1 %v620_v17  ;;  %v556_v33 = vor.u32 %v757_v26, %v553_v27  ;;  %v560_v34 = vor.u32 %v766_v30, %v559_v28  ;;  %v703_v35 = vld [vmem:[%s1169_s0 + $0x118] sm:$0xf]  ;;  %v564_v37 = vor.u32 %v758_v31, %v561_v32  ;;  %v901_v38 = vld [vmem:[%s1170_s1] sm:$0xf]  ;;  %v792_v40 = vld [vmem:[%s1169_s0 + $0x11c] sm:$0xf] }
   0xa   :  { %337 = vmatpush.bf16.msra.mxu2 %v624_v21  ;;  %v800_v36 = vld [vmem:[%s1169_s0 + $0x154] sm:$0xf0]  ;;  %v705_v41 = vld [vmem:[%s1169_s0 + $0x158] sm:$0xf0]  ;;  %v695_v42 = vld [vmem:[%s1169_s0 + $0x110] sm:$0xf] }
   0xb   :  { %350 = vmatpush.bf16.msra.mxu3 %v628_v25  ;;  %v704_v39 = vor.u32 %v800_v36, %v703_v35  ;;  %v708_v43 = vor.u32 %v792_v40, %v705_v41  ;;  %v799_v44 = vld [vmem:[%s1169_s0 + $0x14c] sm:$0xf0]  ;;  %v791_v45 = vld [vmem:[%s1169_s0 + $0x114] sm:$0xf]  ;;  %v639_v47 = vld [vmem:[%s1169_s0 + $0x98] sm:$0xf] }
   0xc   :  { %v697_v46 = vld [vmem:[%s1169_s0 + $0x150] sm:$0xf0]  ;;  %v784_v48 = vld [vmem:[%s1169_s0 + $0xd4] sm:$0xf0]  ;;  %v776_v49 = vld [vmem:[%s1169_s0 + $0x9c] sm:$0xf]  ;;  %v696_v50 = vor.u32 %v799_v44, %v695_v42 }
   0xd   :  { %312 = vmatpush.bf16.msra.mxu0 %v552_v29  ;;  %325 = vmatpush.bf16.msra.mxu1 %v556_v33  ;;  %v641_v51 = vld [vmem:[%s1169_s0 + $0xd8] sm:$0xf0]  ;;  %v631_v52 = vld [vmem:[%s1169_s0 + $0x90] sm:$0xf]  ;;  %v700_v53 = vor.u32 %v791_v45, %v697_v46  ;;  %v640_v54 = vor.u32 %v784_v48, %v639_v47  ;;  %v775_v56 = vld [vmem:[%s1169_s0 + $0x94] sm:$0xf] }
   0xe   :  { %338 = vmatpush.bf16.msra.mxu2 %v560_v34  ;;  %v783_v55 = vld [vmem:[%s1169_s0 + $0xcc] sm:$0xf0]  ;;  %v633_v57 = vld [vmem:[%s1169_s0 + $0xd0] sm:$0xf0]  ;;  %v644_v58 = vor.u32 %v776_v49, %v641_v51  ;;  %v575_v59 = vld [vmem:[%s1169_s0 + $0x18] sm:$0xf] }
   0xf   :  { %351 = vmatpush.bf16.msra.mxu3 %v564_v37  ;;  %v768_v60 = vld [vmem:[%s1169_s0 + $0x54] sm:$0xf0]  ;;  %v760_v61 = vld [vmem:[%s1169_s0 + $0x1c] sm:$0xf]  ;;  %v567_v63 = vld [vmem:[%s1169_s0 + $0x10] sm:$0xf]  ;;  %v632_v1 = vor.u32 %v783_v55, %v631_v52  ;;  %v636_v5 = vor.u32 %v775_v56, %v633_v57 }
  0x10   :  { %741 = vmatmul.msk.bf16.vlgmr.msra.gmra.mxu0 %vm301_vm0, %v901_v38  ;;  %742 = vmatmul.msk.bf16.vlgmr.msra.gmra.mxu1 %vm301_vm0, %v901_v38  ;;  %v577_v62 = vld [vmem:[%s1169_s0 + $0x58] sm:$0xf0]  ;;  %v767_v0 = vld [vmem:[%s1169_s0 + $0x4c] sm:$0xf0]  ;;  %v759_v2 = vld [vmem:[%s1169_s0 + $0x14] sm:$0xf]  ;;  %v576_v6 = vor.u32 %v768_v60, %v575_v59 }
  0x11   :  { %743 = vmatmul.msk.bf16.vlgmr.msra.gmra.mxu2 %vm301_vm0, %v901_v38  ;;  %362 = vmatpush.bf16.msrb.mxu0 %v696_v50  ;;  %v719_v3 = vld [vmem:[%s1169_s0 + $0x128] sm:$0xf]  ;;  %v569_v7 = vld [vmem:[%s1169_s0 + $0x50] sm:$0xf0]  ;;  %v794_v8 = vld [vmem:[%s1169_s0 + $0x12c] sm:$0xf]  ;;  %v580_v10 = vor.u32 %v760_v61, %v577_v62  ;;  %v568_v19 = vor.u32 %v767_v0, %v567_v63 }
  0x12   :  { %388 = vmatpush.bf16.msrb.mxu2 %v704_v39  ;;  %744 = vmatmul.msk.bf16.vlgmr.msra.gmra.mxu3 %vm301_vm0, %v901_v38  ;;  %v802_v4 = vld [vmem:[%s1169_s0 + $0x164] sm:$0xf0]  ;;  %v721_v9 = vld [vmem:[%s1169_s0 + $0x168] sm:$0xf0]  ;;  %v711_v12 = vld [vmem:[%s1169_s0 + $0x120] sm:$0xf]  ;;  %v572_v22 = vor.u32 %v759_v2, %v569_v7 }
  0x13   :  { %401 = vmatpush.bf16.msrb.mxu3 %v708_v43  ;;  %375 = vmatpush.bf16.msrb.mxu1 %v700_v53  ;;  %v720_v11 = vor.u32 %v802_v4, %v719_v3  ;;  %v801_v13 = vld [vmem:[%s1169_s0 + $0x15c] sm:$0xf0]  ;;  %v793_v14 = vld [vmem:[%s1169_s0 + $0x124] sm:$0xf]  ;;  %v724_v15 = vor.u32 %v794_v8, %v721_v9  ;;  %v655_v17 = vld [vmem:[%s1169_s0 + $0xa8] sm:$0xf] }
  0x14   :  { %v713_v16 = vld [vmem:[%s1169_s0 + $0x160] sm:$0xf0]  ;;  %v786_v18 = vld [vmem:[%s1169_s0 + $0xe4] sm:$0xf0]  ;;  %v778_v20 = vld [vmem:[%s1169_s0 + $0xac] sm:$0xf]  ;;  %v712_v23 = vor.u32 %v801_v13, %v711_v12 }
  0x15   :  { %363 = vmatpush.bf16.msrb.mxu0 %v632_v1  ;;  %v657_v21 = vld [vmem:[%s1169_s0 + $0xe8] sm:$0xf0]  ;;  %v716_v24 = vor.u32 %v793_v14, %v713_v16  ;;  %v656_v25 = vor.u32 %v786_v18, %v655_v17  ;;  %v647_v26 = vld [vmem:[%s1169_s0 + $0xa0] sm:$0xf]  ;;  %v777_v29 = vld [vmem:[%s1169_s0 + $0xa4] sm:$0xf] }
  0x16   :  { %389 = vmatpush.bf16.msrb.mxu2 %v640_v54  ;;  %v785_v27 = vld [vmem:[%s1169_s0 + $0xdc] sm:$0xf0]  ;;  %v660_v28 = vor.u32 %v778_v20, %v657_v21  ;;  %v649_v30 = vld [vmem:[%s1169_s0 + $0xe0] sm:$0xf0]  ;;  %v591_v31 = vld [vmem:[%s1169_s0 + $0x28] sm:$0xf] }
  0x17   :  { %402 = vmatpush.bf16.msrb.mxu3 %v644_v58  ;;  %376 = vmatpush.bf16.msrb.mxu1 %v636_v5  ;;  %v770_v32 = vld [vmem:[%s1169_s0 + $0x64] sm:$0xf0]  ;;  %v648_v33 = vor.u32 %v785_v27, %v647_v26  ;;  %v762_v34 = vld [vmem:[%s1169_s0 + $0x2c] sm:$0xf]  ;;  %v583_v36 = vld [vmem:[%s1169_s0 + $0x20] sm:$0xf]  ;;  %v652_v37 = vor.u32 %v777_v29, %v649_v30 }
  0x18   :  { %v593_v35 = vld [vmem:[%s1169_s0 + $0x68] sm:$0xf0]  ;;  %v769_v39 = vld [vmem:[%s1169_s0 + $0x5c] sm:$0xf0]  ;;  %v761_v40 = vld [vmem:[%s1169_s0 + $0x24] sm:$0xf]  ;;  %v592_v45 = vor.u32 %v770_v32, %v591_v31 }
  0x19   :  { %364 = vmatpush.bf16.msrb.mxu0 %v568_v19  ;;  %v585_v41 = vld [vmem:[%s1169_s0 + $0x60] sm:$0xf0]  ;;  %v735_v42 = vld [vmem:[%s1169_s0 + $0x138] sm:$0xf]  ;;  %v796_v44 = vld [vmem:[%s1169_s0 + $0x13c] sm:$0xf]  ;;  %v596_v49 = vor.u32 %v762_v34, %v593_v35  ;;  %v584_v50 = vor.u32 %v769_v39, %v583_v36 }
  0x1a   :  { %390 = vmatpush.bf16.msrb.mxu2 %v576_v6  ;;  %v804_v43 = vld [vmem:[%s1169_s0 + $0x174] sm:$0xf0]  ;;  %v737_v46 = vld [vmem:[%s1169_s0 + $0x178] sm:$0xf0]  ;;  %v727_v47 = vld [vmem:[%s1169_s0 + $0x130] sm:$0xf]  ;;  %v588_v53 = vor.u32 %v761_v40, %v585_v41 }
  0x1b   :  { %403 = vmatpush.bf16.msrb.mxu3 %v580_v10  ;;  %377 = vmatpush.bf16.msrb.mxu1 %v572_v22  ;;  %v803_v48 = vld [vmem:[%s1169_s0 + $0x16c] sm:$0xf0]  ;;  %v795_v51 = vld [vmem:[%s1169_s0 + $0x134] sm:$0xf]  ;;  %v736_v54 = vor.u32 %v804_v43, %v735_v42  ;;  %v740_v55 = vor.u32 %v796_v44, %v737_v46  ;;  %v671_v57 = vld [vmem:[%s1169_s0 + $0xb8] sm:$0xf] }
  0x1c   :  { %v729_v52 = vld [vmem:[%s1169_s0 + $0x170] sm:$0xf0]  ;;  %v728_v56 = vor.u32 %v803_v48, %v727_v47  ;;  %v788_v58 = vld [vmem:[%s1169_s0 + $0xf4] sm:$0xf0]  ;;  %v780_v59 = vld [vmem:[%s1169_s0 + $0xbc] sm:$0xf] }
  0x1d   :  { %414 = vmatpush.bf16.msra.mxu0 %v712_v23  ;;  %v732_v60 = vor.u32 %v795_v51, %v729_v52  ;;  %v673_v61 = vld [vmem:[%s1169_s0 + $0xf8] sm:$0xf0]  ;;  %v663_v62 = vld [vmem:[%s1169_s0 + $0xb0] sm:$0xf]  ;;  %v779_v0 = vld [vmem:[%s1169_s0 + $0xb4] sm:$0xf]  ;;  %v672_v2 = vor.u32 %v788_v58, %v671_v57 }
  0x1e   :  { %440 = vmatpush.bf16.msra.mxu2 %v720_v11  ;;  %v787_v63 = vld [vmem:[%s1169_s0 + $0xec] sm:$0xf0]  ;;  %v665_v1 = vld [vmem:[%s1169_s0 + $0xf0] sm:$0xf0]  ;;  %v676_v3 = vor.u32 %v780_v59, %v673_v61  ;;  %v607_v5 = vld [vmem:[%s1169_s0 + $0x38] sm:$0xf] }
  0x1f   :  { %453 = vmatpush.bf16.msra.mxu3 %v724_v15  ;;  %427 = vmatpush.bf16.msra.mxu1 %v716_v24  ;;  %v664_v4 = vor.u32 %v787_v63, %v663_v62  ;;  %v772_v6 = vld [vmem:[%s1169_s0 + $0x74] sm:$0xf0]  ;;  %v764_v7 = vld [vmem:[%s1169_s0 + $0x3c] sm:$0xf]  ;;  %v668_v8 = vor.u32 %v779_v0, %v665_v1  ;;  %v599_v10 = vld [vmem:[%s1169_s0 + $0x30] sm:$0xf] }
  0x20   :  { %745 = vmatmul.msk.bf16.vlgmr.msrb.gmra.mxu0 %vm301_vm0, %v901_v38  ;;  %746 = vmatmul.msk.bf16.vlgmr.msrb.gmra.mxu1 %vm301_vm0, %v901_v38  ;;  %v609_v9 = vld [vmem:[%s1169_s0 + $0x78] sm:$0xf0]  ;;  %v771_v11 = vld [vmem:[%s1169_s0 + $0x6c] sm:$0xf0]  ;;  %v763_v12 = vld [vmem:[%s1169_s0 + $0x34] sm:$0xf]  ;;  %v608_v14 = vor.u32 %v772_v6, %v607_v5 }
  0x21   :  { %415 = vmatpush.bf16.msra.mxu0 %v648_v33  ;;  %747 = vmatmul.msk.bf16.vlgmr.msrb.gmra.mxu2 %vm301_vm0, %v901_v38  ;;  %v601_v13 = vld [vmem:[%s1169_s0 + $0x70] sm:$0xf0]  ;;  %v612_v15 = vor.u32 %v764_v7, %v609_v9  ;;  %v600_v16 = vor.u32 %v771_v11, %v599_v10 }
  0x22   :  { %441 = vmatpush.bf16.msra.mxu2 %v656_v25  ;;  %748 = vmatmul.msk.bf16.vlgmr.msrb.gmra.mxu3 %vm301_vm0, %v901_v38  ;;  %v604_v17 = vor.u32 %v763_v12, %v601_v13 }
  0x23   :  { %454 = vmatpush.bf16.msra.mxu3 %v660_v28  ;;  %428 = vmatpush.bf16.msra.mxu1 %v652_v37 }
  0x25   :  { %416 = vmatpush.bf16.msra.mxu0 %v584_v50 }
  0x26   :  { %442 = vmatpush.bf16.msra.mxu2 %v592_v45 }
  0x27   :  { %455 = vmatpush.bf16.msra.mxu3 %v596_v49  ;;  %429 = vmatpush.bf16.msra.mxu1 %v588_v53 }
  0x29   :  { %466 = vmatpush.bf16.msrb.mxu0 %v728_v56 }
  0x2a   :  { %492 = vmatpush.bf16.msrb.mxu2 %v736_v54 }
  0x2b   :  { %505 = vmatpush.bf16.msrb.mxu3 %v740_v55  ;;  %479 = vmatpush.bf16.msrb.mxu1 %v732_v60 }
  0x2d   :  { %467 = vmatpush.bf16.msrb.mxu0 %v664_v4 }
  0x2e   :  { %493 = vmatpush.bf16.msrb.mxu2 %v672_v2 }
  0x2f   :  { %506 = vmatpush.bf16.msrb.mxu3 %v676_v3  ;;  %480 = vmatpush.bf16.msrb.mxu1 %v668_v8 }
  0x30   :  { %749 = vmatmul.msk.bf16.vlgmr.msra.gmra.mxu0 %vm301_vm0, %v901_v38  ;;  %750 = vmatmul.msk.bf16.vlgmr.msra.gmra.mxu1 %vm301_vm0, %v901_v38 }
  0x31   :  { %468 = vmatpush.bf16.msrb.mxu0 %v600_v16  ;;  %751 = vmatmul.msk.bf16.vlgmr.msra.gmra.mxu2 %vm301_vm0, %v901_v38 }
  0x32   :  { %494 = vmatpush.bf16.msrb.mxu2 %v608_v14  ;;  %752 = vmatmul.msk.bf16.vlgmr.msra.gmra.mxu3 %vm301_vm0, %v901_v38 }
  0x33   :  { %507 = vmatpush.bf16.msrb.mxu3 %v612_v15  ;;  %481 = vmatpush.bf16.msrb.mxu1 %v604_v17 }
  0x40   :  { %753 = vmatmul.msk.bf16.vlgmr.msrb.gmra.mxu0 %vm301_vm0, %v901_v38  ;;  %754 = vmatmul.msk.bf16.vlgmr.msrb.gmra.mxu1 %vm301_vm0, %v901_v38 }
  0x41   :  { %755 = vmatmul.msk.bf16.vlgmr.msrb.gmra.mxu2 %vm301_vm0, %v901_v38 }
  0x42   :  { %756 = vmatmul.msk.bf16.vlgmr.msrb.gmra.mxu3 %vm301_vm0, %v901_v38 }
  0x8d   :  { %v314_v18 = vpop.f32.mrf.mxu0  ;;  %v327_v20 = vpop.f32.mrf.mxu1 }
  0x8e   :  { %v513_v19 = vmax.f32 %v314_v18, 0.0  ;;  %v514_v21 = vmax.f32 %v327_v20, 0.0 }
  0x90   :  { %v529_v22 = vpack.c.bf16 %v514_v21, %v513_v19 }
  0x92   :  { %537 = vst [vmem:[%s1171_s2] sm:$0xff] %v529_v22 }
  0x94   :  { %v340_v23 = vpop.f32.mrf.mxu2 }
  0x95   :  { %v515_v24 = vmax.f32 %v340_v23, 0.0  ;;  %v353_v25 = vpop.f32.mrf.mxu3  ;;  %v316_v26 = vpop.f32.mrf.mxu0 }
  0x96   :  { %v516_v27 = vmax.f32 %v353_v25, 0.0  ;;  %v329_v28 = vpop.f32.mrf.mxu1 }
  0x98   :  { %v530_v29 = vpack.c.bf16 %v516_v27, %v515_v24 }
  0x9a   :  { %538 = vst [vmem:[%s1171_s2 + $0x8] sm:$0xff] %v530_v29 }
  0x9c   :  { %v342_v38 = vpop.f32.mrf.mxu2 }
  0x9d   :  { %v355_v30 = vpop.f32.mrf.mxu3  ;;  %v366_v31 = vpop.f32.mrf.mxu0 }
  0x9e   :  { %v517_v32 = vmax.f32 %v366_v31, 0.0  ;;  %v379_v33 = vpop.f32.mrf.mxu1 }
  0x9f   :  { %v518_v34 = vmax.f32 %v379_v33, 0.0 }
  0xa1   :  { %v531_v35 = vpack.c.bf16 %v518_v34, %v517_v32 }
  0xa3   :  { %539 = vst [vmem:[%s1171_s2 + $0x10] sm:$0xff] %v531_v35 }
  0xa4   :  { %v392_v36 = vpop.f32.mrf.mxu2 }
  0xa5   :  { %v519_v37 = vmax.f32 %v392_v36, 0.0  ;;  %v405_v39 = vpop.f32.mrf.mxu3  ;;  %v368_v40 = vpop.f32.mrf.mxu0 }
  0xa6   :  { %v520_v41 = vmax.f32 %v405_v39, 0.0  ;;  %v381_v42 = vpop.f32.mrf.mxu1 }
  0xa8   :  { %v532_v43 = vpack.c.bf16 %v520_v41, %v519_v37 }
  0xaa   :  { %540 = vst [vmem:[%s1171_s2 + $0x18] sm:$0xff] %v532_v43 }
  0xac   :  { %v394_v44 = vpop.f32.mrf.mxu2 }
  0xad   :  { %v407_v45 = vpop.f32.mrf.mxu3  ;;  %v418_v46 = vpop.f32.mrf.mxu0 }
  0xae   :  { %v521_v47 = vmax.f32 %v418_v46, 0.0  ;;  %v431_v48 = vpop.f32.mrf.mxu1 }
  0xaf   :  { %v522_v49 = vmax.f32 %v431_v48, 0.0 }
  0xb1   :  { %v533_v50 = vpack.c.bf16 %v522_v49, %v521_v47 }
  0xb3   :  { %541 = vst [vmem:[%s1171_s2 + $0x20] sm:$0xff] %v533_v50 }
  0xb4   :  { %v444_v51 = vpop.f32.mrf.mxu2 }
  0xb5   :  { %v523_v52 = vmax.f32 %v444_v51, 0.0  ;;  %v457_v53 = vpop.f32.mrf.mxu3  ;;  %v420_v54 = vpop.f32.mrf.mxu0 }
  0xb6   :  { %v524_v55 = vmax.f32 %v457_v53, 0.0  ;;  %v433_v56 = vpop.f32.mrf.mxu1 }
  0xb8   :  { %v534_v57 = vpack.c.bf16 %v524_v55, %v523_v52 }
  0xba   :  { %542 = vst [vmem:[%s1171_s2 + $0x28] sm:$0xff] %v534_v57 }
  0xbc   :  { %v446_v58 = vpop.f32.mrf.mxu2 }
  0xbd   :  { %v459_v59 = vpop.f32.mrf.mxu3  ;;  %v470_v60 = vpop.f32.mrf.mxu0 }
  0xbe   :  { %v525_v61 = vmax.f32 %v470_v60, 0.0  ;;  %v483_v62 = vpop.f32.mrf.mxu1 }
  0xbf   :  { %v526_v63 = vmax.f32 %v483_v62, 0.0 }
  0xc1   :  { %v535_v0 = vpack.c.bf16 %v526_v63, %v525_v61 }
  0xc3   :  { %543 = vst [vmem:[%s1171_s2 + $0x30] sm:$0xff] %v535_v0 }
  0xc4   :  { %v496_v1 = vpop.f32.mrf.mxu2 }
  0xc5   :  { %v527_v2 = vmax.f32 %v496_v1, 0.0  ;;  %v509_v3 = vpop.f32.mrf.mxu3  ;;  %v472_v4 = vpop.f32.mrf.mxu0 }
  0xc6   :  { %v528_v5 = vmax.f32 %v509_v3, 0.0  ;;  %v485_v6 = vpop.f32.mrf.mxu1 }
  0xc8   :  { %v536_v7 = vpack.c.bf16 %v528_v5, %v527_v2 }
  0xca   :  { %544 = vst [vmem:[%s1171_s2 + $0x38] sm:$0xff] %v536_v7 }
  0xcc   :  { %v498_v8 = vpop.f32.mrf.mxu2 }
  0xcd   :  { %v511_v9 = vpop.f32.mrf.mxu3 }

// kernel: b_discriminator_forward.5
= control target key start
LH: loop header
LB: loop body
LE: loop exit
PB: predicated region body
PF: predicated region fallthrough
CT: control target
= control target key end

     0   :  { %s674_s0 = inlined_call_operand.vmem [shape: bf16[128,512], index: 0, kind: input, shape index: {}]   ;;  %s675_s1 = inlined_call_operand.vmem [shape: bf16[16,128], index: 1, kind: input, shape index: {}]   ;;  %s676_s2 = inlined_call_operand.vmem [shape: bf16[16,512], index: 2, kind: output, shape index: {}]  }
   0x1   :  { %v405_v0 = vld [vmem:[%s674_s0 + $0xe0] sm:$0xf]  ;;  %v450_v1 = vld [vmem:[%s674_s0 + $0xec] sm:$0xf0]  ;;  %v448_v2 = vld [vmem:[%s674_s0 + $0xe4] sm:$0xf] }
   0x2   :  { %v406_v3 = vor.u32 %v450_v1, %v405_v0  ;;  %v407_v4 = vld [vmem:[%s674_s0 + $0xf0] sm:$0xf0]  ;;  %v413_v5 = vld [vmem:[%s674_s0 + $0xe8] sm:$0xf]  ;;  %v451_v6 = vld [vmem:[%s674_s0 + $0xf4] sm:$0xf0] }
   0x3   :  { %v410_v7 = vor.u32 %v448_v2, %v407_v4  ;;  %v414_v8 = vor.u32 %v451_v6, %v413_v5  ;;  %v449_v9 = vld [vmem:[%s674_s0 + $0xec] sm:$0xf]  ;;  %v415_v10 = vld [vmem:[%s674_s0 + $0xf8] sm:$0xf0]  ;;  %v389_v11 = vld [vmem:[%s674_s0 + $0xc0] sm:$0xf] }
   0x4   :  { %211 = vmatpush.bf16.msra.mxu0 %v406_v3  ;;  %v418_v12 = vor.u32 %v449_v9, %v415_v10  ;;  %v446_v13 = vld [vmem:[%s674_s0 + $0xcc] sm:$0xf0]  ;;  %v444_v14 = vld [vmem:[%s674_s0 + $0xc4] sm:$0xf]  ;;  %v391_v15 = vld [vmem:[%s674_s0 + $0xd0] sm:$0xf0] }
   0x5   :  { %225 = vmatpush.bf16.msra.mxu1 %v410_v7  ;;  %239 = vmatpush.bf16.msra.mxu2 %v414_v8  ;;  %v390_v16 = vor.u32 %v446_v13, %v389_v11  ;;  %v394_v17 = vor.u32 %v444_v14, %v391_v15  ;;  %v397_v18 = vld [vmem:[%s674_s0 + $0xc8] sm:$0xf]  ;;  %v447_v19 = vld [vmem:[%s674_s0 + $0xd4] sm:$0xf0]  ;;  %v445_v20 = vld [vmem:[%s674_s0 + $0xcc] sm:$0xf] }
   0x6   :  { %253 = vmatpush.bf16.msra.mxu3 %v418_v12  ;;  %v398_v21 = vor.u32 %v447_v19, %v397_v18  ;;  %v399_v22 = vld [vmem:[%s674_s0 + $0xd8] sm:$0xf0]  ;;  %v373_v23 = vld [vmem:[%s674_s0 + $0xa0] sm:$0xf]  ;;  %v442_v24 = vld [vmem:[%s674_s0 + $0xac] sm:$0xf0] }
   0x7   :  { %v402_v25 = vor.u32 %v445_v20, %v399_v22  ;;  %v440_v26 = vld [vmem:[%s674_s0 + $0xa4] sm:$0xf]  ;;  %v375_v27 = vld [vmem:[%s674_s0 + $0xb0] sm:$0xf0]  ;;  %v381_v28 = vld [vmem:[%s674_s0 + $0xa8] sm:$0xf]  ;;  %v374_v29 = vor.u32 %v442_v24, %v373_v23 }
   0x8   :  { %212 = vmatpush.bf16.msra.mxu0 %v390_v16  ;;  %v443_v30 = vld [vmem:[%s674_s0 + $0xb4] sm:$0xf0]  ;;  %v441_v31 = vld [vmem:[%s674_s0 + $0xac] sm:$0xf]  ;;  %v383_v32 = vld [vmem:[%s674_s0 + $0xb8] sm:$0xf0]  ;;  %v378_v33 = vor.u32 %v440_v26, %v375_v27 }
   0x9   :  { %226 = vmatpush.bf16.msra.mxu1 %v394_v17  ;;  %240 = vmatpush.bf16.msra.mxu2 %v398_v21  ;;  %v382_v34 = vor.u32 %v443_v30, %v381_v28  ;;  %v357_v35 = vld [vmem:[%s674_s0 + $0x80] sm:$0xf]  ;;  %v438_v36 = vld [vmem:[%s674_s0 + $0x8c] sm:$0xf0]  ;;  %v436_v37 = vld [vmem:[%s674_s0 + $0x84] sm:$0xf]  ;;  %v386_v38 = vor.u32 %v441_v31, %v383_v32 }
   0xa   :  { %254 = vmatpush.bf16.msra.mxu3 %v402_v25  ;;  %v359_v39 = vld [vmem:[%s674_s0 + $0x90] sm:$0xf0]  ;;  %v365_v40 = vld [vmem:[%s674_s0 + $0x88] sm:$0xf]  ;;  %v439_v41 = vld [vmem:[%s674_s0 + $0x94] sm:$0xf0]  ;;  %v358_v44 = vor.u32 %v438_v36, %v357_v35 }
   0xb   :  { %v437_v42 = vld [vmem:[%s674_s0 + $0x8c] sm:$0xf]  ;;  %v367_v43 = vld [vmem:[%s674_s0 + $0x98] sm:$0xf0]  ;;  %v362_v45 = vor.u32 %v436_v37, %v359_v39  ;;  %v366_v46 = vor.u32 %v439_v41, %v365_v40  ;;  %v341_v47 = vld [vmem:[%s674_s0 + $0x60] sm:$0xf] }
   0xc   :  { %213 = vmatpush.bf16.msra.mxu0 %v374_v29  ;;  %v434_v48 = vld [vmem:[%s674_s0 + $0x6c] sm:$0xf0]  ;;  %v432_v49 = vld [vmem:[%s674_s0 + $0x64] sm:$0xf]  ;;  %v370_v50 = vor.u32 %v437_v42, %v367_v43  ;;  %v343_v51 = vld [vmem:[%s674_s0 + $0x70] sm:$0xf0] }
   0xd   :  { %227 = vmatpush.bf16.msra.mxu1 %v378_v33  ;;  %241 = vmatpush.bf16.msra.mxu2 %v382_v34  ;;  %v349_v52 = vld [vmem:[%s674_s0 + $0x68] sm:$0xf]  ;;  %v435_v53 = vld [vmem:[%s674_s0 + $0x74] sm:$0xf0]  ;;  %v433_v54 = vld [vmem:[%s674_s0 + $0x6c] sm:$0xf]  ;;  %v342_v56 = vor.u32 %v434_v48, %v341_v47  ;;  %v346_v57 = vor.u32 %v432_v49, %v343_v51 }
   0xe   :  { %255 = vmatpush.bf16.msra.mxu3 %v386_v38  ;;  %v351_v55 = vld [vmem:[%s674_s0 + $0x78] sm:$0xf0]  ;;  %v350_v58 = vor.u32 %v435_v53, %v349_v52  ;;  %v325_v59 = vld [vmem:[%s674_s0 + $0x40] sm:$0xf]  ;;  %v430_v60 = vld [vmem:[%s674_s0 + $0x4c] sm:$0xf0] }
   0xf   :  { %v428_v61 = vld [vmem:[%s674_s0 + $0x44] sm:$0xf]  ;;  %v354_v62 = vor.u32 %v433_v54, %v351_v55  ;;  %v327_v63 = vld [vmem:[%s674_s0 + $0x50] sm:$0xf0]  ;;  %v333_v0 = vld [vmem:[%s674_s0 + $0x48] sm:$0xf]  ;;  %v326_v4 = vor.u32 %v430_v60, %v325_v59 }
  0x10   :  { %214 = vmatpush.bf16.msra.mxu0 %v358_v44  ;;  %v431_v1 = vld [vmem:[%s674_s0 + $0x54] sm:$0xf0]  ;;  %v429_v2 = vld [vmem:[%s674_s0 + $0x4c] sm:$0xf]  ;;  %v335_v3 = vld [vmem:[%s674_s0 + $0x58] sm:$0xf0]  ;;  %v330_v5 = vor.u32 %v428_v61, %v327_v63 }
  0x11   :  { %228 = vmatpush.bf16.msra.mxu1 %v362_v45  ;;  %242 = vmatpush.bf16.msra.mxu2 %v366_v46  ;;  %v334_v6 = vor.u32 %v431_v1, %v333_v0  ;;  %v309_v7 = vld [vmem:[%s674_s0 + $0x20] sm:$0xf]  ;;  %v426_v8 = vld [vmem:[%s674_s0 + $0x2c] sm:$0xf0]  ;;  %v424_v9 = vld [vmem:[%s674_s0 + $0x24] sm:$0xf]  ;;  %v338_v10 = vor.u32 %v429_v2, %v335_v3 }
  0x12   :  { %256 = vmatpush.bf16.msra.mxu3 %v370_v50  ;;  %v311_v11 = vld [vmem:[%s674_s0 + $0x30] sm:$0xf0]  ;;  %v317_v12 = vld [vmem:[%s674_s0 + $0x28] sm:$0xf]  ;;  %v427_v13 = vld [vmem:[%s674_s0 + $0x34] sm:$0xf0]  ;;  %v310_v16 = vor.u32 %v426_v8, %v309_v7 }
  0x13   :  { %v425_v14 = vld [vmem:[%s674_s0 + $0x2c] sm:$0xf]  ;;  %v319_v15 = vld [vmem:[%s674_s0 + $0x38] sm:$0xf0]  ;;  %v314_v17 = vor.u32 %v424_v9, %v311_v11  ;;  %v318_v18 = vor.u32 %v427_v13, %v317_v12  ;;  %v293_v19 = vld [vmem:[%s674_s0] sm:$0xf] }
  0x14   :  { %215 = vmatpush.bf16.msra.mxu0 %v342_v56  ;;  %v422_v20 = vld [vmem:[%s674_s0 + $0xc] sm:$0xf0]  ;;  %v420_v21 = vld [vmem:[%s674_s0 + $0x4] sm:$0xf]  ;;  %v322_v22 = vor.u32 %v425_v14, %v319_v15  ;;  %v295_v23 = vld [vmem:[%s674_s0 + $0x10] sm:$0xf0] }
  0x15   :  { %229 = vmatpush.bf16.msra.mxu1 %v346_v57  ;;  %243 = vmatpush.bf16.msra.mxu2 %v350_v58  ;;  %v301_v24 = vld [vmem:[%s674_s0 + $0x8] sm:$0xf]  ;;  %v423_v25 = vld [vmem:[%s674_s0 + $0x14] sm:$0xf0]  ;;  %v421_v26 = vld [vmem:[%s674_s0 + $0xc] sm:$0xf]  ;;  %v294_v28 = vor.u32 %v422_v20, %v293_v19  ;;  %v298_v29 = vor.u32 %v420_v21, %v295_v23 }
  0x16   :  { %257 = vmatpush.bf16.msra.mxu3 %v354_v62  ;;  %v303_v27 = vld [vmem:[%s674_s0 + $0x18] sm:$0xf0]  ;;  %v302_v30 = vor.u32 %v423_v25, %v301_v24  ;;  %v419_v32 = vld [vmem:[%s675_s1] sm:$0xff] }
  0x17   :  { %v306_v31 = vor.u32 %v421_v26, %v303_v27 }
  0x18   :  { %216 = vmatpush.bf16.msra.mxu0 %v326_v4 }
  0x19   :  { %230 = vmatpush.bf16.msra.mxu1 %v330_v5  ;;  %244 = vmatpush.bf16.msra.mxu2 %v334_v6 }
  0x1a   :  { %258 = vmatpush.bf16.msra.mxu3 %v338_v10 }
  0x1c   :  { %217 = vmatpush.bf16.msra.mxu0 %v310_v16 }
  0x1d   :  { %231 = vmatpush.bf16.msra.mxu1 %v314_v17  ;;  %245 = vmatpush.bf16.msra.mxu2 %v318_v18 }
  0x1e   :  { %259 = vmatpush.bf16.msra.mxu3 %v322_v22 }
  0x20   :  { %218 = vmatpush.bf16.msra.mxu0 %v294_v28 }
  0x21   :  { %232 = vmatpush.bf16.msra.mxu1 %v298_v29  ;;  %246 = vmatpush.bf16.msra.mxu2 %v302_v30 }
  0x22   :  { %260 = vmatpush.bf16.msra.mxu3 %v306_v31 }
  0x23   :  { %219 = vmatmul.bf16.vlgmr.msra.gmra.mxu0 %v419_v32 }
  0x24   :  { %233 = vmatmul.bf16.vlgmr.msra.gmra.mxu1 %v419_v32  ;;  %247 = vmatmul.bf16.vlgmr.msra.gmra.mxu2 %v419_v32 }
  0x25   :  { %261 = vmatmul.bf16.vlgmr.msra.gmra.mxu3 %v419_v32 }
  0xa0   :  { %v220_v33 = vpop.f32.mrf.mxu0 }
  0xa1   :  { %v267_v34 = vmax.f32 %v220_v33, 0.0  ;;  %v234_v35 = vpop.f32.mrf.mxu1 }
  0xa2   :  { %v268_v36 = vmax.f32 %v234_v35, 0.0 }
  0xa4   :  { %v275_v37 = vpack.c.bf16 %v268_v36, %v267_v34 }
  0xa6   :  { %279 = vst [vmem:[%s676_s2] sm:$0xff] %v275_v37 }
  0xa7   :  { %v248_v38 = vpop.f32.mrf.mxu2 }
  0xa8   :  { %v269_v39 = vmax.f32 %v248_v38, 0.0  ;;  %v262_v40 = vpop.f32.mrf.mxu3  ;;  %v222_v41 = vpop.f32.mrf.mxu0 }
  0xa9   :  { %v270_v42 = vmax.f32 %v262_v40, 0.0  ;;  %v271_v43 = vmax.f32 %v222_v41, 0.0  ;;  %v236_v44 = vpop.f32.mrf.mxu1 }
  0xaa   :  { %v272_v45 = vmax.f32 %v236_v44, 0.0 }
  0xab   :  { %v276_v46 = vpack.c.bf16 %v270_v42, %v269_v39 }
  0xac   :  { %v277_v47 = vpack.c.bf16 %v272_v45, %v271_v43 }
  0xad   :  { %280 = vst [vmem:[%s676_s2 + $0x8] sm:$0xff] %v276_v46 }
  0xae   :  { %281 = vst [vmem:[%s676_s2 + $0x10] sm:$0xff] %v277_v47 }
  0xaf   :  { %v250_v48 = vpop.f32.mrf.mxu2 }
  0xb0   :  { %v273_v49 = vmax.f32 %v250_v48, 0.0  ;;  %v264_v50 = vpop.f32.mrf.mxu3 }
  0xb1   :  { %v274_v51 = vmax.f32 %v264_v50, 0.0 }
  0xb3   :  { %v278_v52 = vpack.c.bf16 %v274_v51, %v273_v49 }
  0xb5   :  { %282 = vst [vmem:[%s676_s2 + $0x18] sm:$0xff] %v278_v52 }

// kernel: b_discriminator_forward.6
= control target key start
LH: loop header
LB: loop body
LE: loop exit
PB: predicated region body
PF: predicated region fallthrough
CT: control target
= control target key end

     0   :  { %s437_s0 = inlined_call_operand.vmem [shape: bf16[256,128], index: 0, kind: input, shape index: {}]   ;;  %s438_s1 = inlined_call_operand.vmem [shape: bf16[32,256], index: 1, kind: input, shape index: {}]   ;;  %s439_s2 = inlined_call_operand.vmem [shape: bf16[32,128], index: 2, kind: output, shape index: {}]  }
   0x1   :  { %v308_v0 = vld [vmem:[%s437_s0 + $0x38] sm:$0xff]  ;;  %v307_v2 = vld [vmem:[%s437_s0 + $0x30] sm:$0xff]  ;;  %v306_v4 = vld [vmem:[%s437_s0 + $0x28] sm:$0xff] }
   0x2   :  { %v316_v1 = vld [vmem:[%s437_s0 + $0x78] sm:$0xff]  ;;  %163 = vmatpush.bf16.msra.mxu0 %v308_v0  ;;  %328 = vmatpush.bf16.msra.mxu2 %v308_v0  ;;  %v315_v3 = vld [vmem:[%s437_s0 + $0x70] sm:$0xff]  ;;  %v314_v5 = vld [vmem:[%s437_s0 + $0x68] sm:$0xff] }
   0x3   :  { %182 = vmatpush.bf16.msra.mxu1 %v316_v1  ;;  %336 = vmatpush.bf16.msra.mxu3 %v316_v1  ;;  %v305_v6 = vld [vmem:[%s437_s0 + $0x20] sm:$0xff]  ;;  %v304_v8 = vld [vmem:[%s437_s0 + $0x18] sm:$0xff]  ;;  %v303_v10 = vld [vmem:[%s437_s0 + $0x10] sm:$0xff] }
   0x4   :  { %v313_v7 = vld [vmem:[%s437_s0 + $0x60] sm:$0xff]  ;;  %v312_v9 = vld [vmem:[%s437_s0 + $0x58] sm:$0xff]  ;;  %v311_v11 = vld [vmem:[%s437_s0 + $0x50] sm:$0xff] }
   0x5   :  { %v302_v12 = vld [vmem:[%s437_s0 + $0x8] sm:$0xff]  ;;  %v301_v14 = vld [vmem:[%s437_s0] sm:$0xff]  ;;  %v227_v18 = vld [vmem:[%s438_s1 + $0x10] sm:$0xf] }
   0x6   :  { %164 = vmatpush.bf16.msra.mxu0 %v307_v2  ;;  %329 = vmatpush.bf16.msra.mxu2 %v307_v2  ;;  %v310_v13 = vld [vmem:[%s437_s0 + $0x48] sm:$0xff]  ;;  %v309_v15 = vld [vmem:[%s437_s0 + $0x40] sm:$0xff]  ;;  %v300_v19 = vld [vmem:[%s438_s1 + $0x14] sm:$0xf0] }
   0x7   :  { %183 = vmatpush.bf16.msra.mxu1 %v315_v3  ;;  %337 = vmatpush.bf16.msra.mxu3 %v315_v3  ;;  %v219_v16 = vld [vmem:[%s438_s1] sm:$0xf]  ;;  %v298_v17 = vld [vmem:[%s438_s1 + $0x4] sm:$0xf0]  ;;  %v297_v20 = vld [vmem:[%s438_s1 + $0x4] sm:$0xf]  ;;  %v228_v25 = vor.u32 %v300_v19, %v227_v18 }
   0x8   :  { %v221_v21 = vld [vmem:[%s438_s1 + $0x8] sm:$0xf0]  ;;  %v299_v22 = vld [vmem:[%s438_s1 + $0x14] sm:$0xf]  ;;  %v229_v23 = vld [vmem:[%s438_s1 + $0x18] sm:$0xf0]  ;;  %v220_v24 = vor.u32 %v298_v17, %v219_v16 }
   0x9   :  { %v224_v26 = vor.u32 %v297_v20, %v221_v21  ;;  %v232_v27 = vor.u32 %v299_v22, %v229_v23 }
   0xa   :  { %165 = vmatpush.bf16.msra.mxu0 %v306_v4  ;;  %330 = vmatpush.bf16.msra.mxu2 %v306_v4 }
   0xb   :  { %184 = vmatpush.bf16.msra.mxu1 %v314_v5  ;;  %338 = vmatpush.bf16.msra.mxu3 %v314_v5 }
   0xe   :  { %166 = vmatpush.bf16.msra.mxu0 %v305_v6  ;;  %331 = vmatpush.bf16.msra.mxu2 %v305_v6 }
   0xf   :  { %185 = vmatpush.bf16.msra.mxu1 %v313_v7  ;;  %339 = vmatpush.bf16.msra.mxu3 %v313_v7 }
  0x12   :  { %167 = vmatpush.bf16.msra.mxu0 %v304_v8  ;;  %332 = vmatpush.bf16.msra.mxu2 %v304_v8 }
  0x13   :  { %186 = vmatpush.bf16.msra.mxu1 %v312_v9  ;;  %340 = vmatpush.bf16.msra.mxu3 %v312_v9 }
  0x16   :  { %168 = vmatpush.bf16.msra.mxu0 %v303_v10  ;;  %333 = vmatpush.bf16.msra.mxu2 %v303_v10 }
  0x17   :  { %187 = vmatpush.bf16.msra.mxu1 %v311_v11  ;;  %341 = vmatpush.bf16.msra.mxu3 %v311_v11 }
  0x1a   :  { %169 = vmatpush.bf16.msra.mxu0 %v302_v12  ;;  %334 = vmatpush.bf16.msra.mxu2 %v302_v12 }
  0x1b   :  { %188 = vmatpush.bf16.msra.mxu1 %v310_v13  ;;  %342 = vmatpush.bf16.msra.mxu3 %v310_v13 }
  0x1e   :  { %170 = vmatpush.bf16.msra.mxu0 %v301_v14  ;;  %335 = vmatpush.bf16.msra.mxu2 %v301_v14 }
  0x1f   :  { %189 = vmatpush.bf16.msra.mxu1 %v309_v15  ;;  %343 = vmatpush.bf16.msra.mxu3 %v309_v15 }
  0x21   :  { %171 = vmatmul.bf16.vlgmr.msra.gmra.mxu0 %v220_v24  ;;  %176 = vmatmul.bf16.vlgmr.msra.gmra.mxu2 %v228_v25 }
  0x22   :  { %190 = vmatmul.bf16.vlgmr.msra.gmra.mxu1 %v224_v26  ;;  %195 = vmatmul.bf16.vlgmr.msra.gmra.mxu3 %v232_v27 }
  0x9e   :  { %v172_v28 = vpop.f32.mrf.mxu0 }
  0x9f   :  { %v191_v29 = vpop.f32.mrf.mxu1 }
  0xa0   :  { %v192_v32 = vadd.f32 %v191_v29, %v172_v28 }
  0xa2   :  { %v201_v36 = vmax.f32 %v192_v32, 0.0 }
  0xa4   :  { %v177_v30 = vpop.f32.mrf.mxu2 }
  0xa5   :  { %v196_v31 = vpop.f32.mrf.mxu3 }
  0xa6   :  { %v174_v33 = vpop.f32.mrf.mxu0  ;;  %v197_v38 = vadd.f32 %v196_v31, %v177_v30 }
  0xa7   :  { %v193_v34 = vpop.f32.mrf.mxu1 }
  0xa8   :  { %v194_v35 = vadd.f32 %v193_v34, %v174_v33  ;;  %v203_v43 = vmax.f32 %v197_v38, 0.0 }
  0xaa   :  { %v202_v37 = vmax.f32 %v194_v35, 0.0 }
  0xac   :  { %v320_v39 = vpack.c.bf16 %v202_v37, %v201_v36  ;;  %v179_v40 = vpop.f32.mrf.mxu2 }
  0xad   :  { %v198_v41 = vpop.f32.mrf.mxu3 }
  0xae   :  { %321 = vst [vmem:[%s439_s2] sm:$0xff] %v320_v39   ;;  %v199_v42 = vadd.f32 %v198_v41, %v179_v40 }
  0xb0   :  { %v204_v44 = vmax.f32 %v199_v42, 0.0 }
  0xb2   :  { %v325_v45 = vpack.c.bf16 %v204_v44, %v203_v43 }
  0xb4   :  { %327 = vst [vmem:[%s439_s2 + $0x8] sm:$0xff] %v325_v45  }

// kernel: b_discriminator_forward.7
= control target key start
LH: loop header
LB: loop body
LE: loop exit
PB: predicated region body
PF: predicated region fallthrough
CT: control target
= control target key end

     0   :  { %s1132_s18 = smov 112   ;;  %vm514_vm0 = vcmask 130048   ;;  %vm571_vm3 = vcmask 0   ;;  %s1524_s0 = inlined_call_operand.vmem [shape: bf16[512,32], index: 0, kind: input, shape index: {}]   ;;  %s1525_s1 = inlined_call_operand.vmem [shape: bf16[64,512], index: 1, kind: input, shape index: {}]   ;;  %s1526_s2 = inlined_call_operand.vmem [shape: bf16[64,16], index: 2, kind: input, shape index: {}]   ;;  %s1527_s3 = inlined_call_operand.vmem [shape: f32[2,1], index: 3, kind: output, shape index: {}]  }
   0x1   :  { %v1095_v0 = vld [vmem:[%s1524_s0 + $0xb8] sm:$0xff]  ;;  %v1094_v4 = vld [vmem:[%s1524_s0 + $0xb0] sm:$0xff]  ;;  %v1101_v8 = vld [vmem:[%s1524_s0 + $0xe8] sm:$0xff] }
   0x2   :  { %v1079_v1 = vld [vmem:[%s1524_s0 + $0x38] sm:$0xff]  ;;  %619 = vrot.lane.b32.xlu0 %v1095_v0, %s1132_s18  ;;  %440 = vmatpush.bf16.msra.mxu2 %v1095_v0  ;;  %v1102_v5 = vld [vmem:[%s1524_s0 + $0xf0] sm:$0xff]  ;;  %v1093_v9 = vld [vmem:[%s1524_s0 + $0xa8] sm:$0xff] }
   0x3   :  { %v1103_v2 = vld [vmem:[%s1524_s0 + $0xf8] sm:$0xff]  ;;  %587 = vrot.lane.b32.xlu1 %v1079_v1, %s1132_s18  ;;  %382 = vmatpush.bf16.msra.mxu0 %v1079_v1  ;;  %v1086_v6 = vld [vmem:[%s1524_s0 + $0x70] sm:$0xff]  ;;  %v1077_v10 = vld [vmem:[%s1524_s0 + $0x28] sm:$0xff] }
   0x4   :  { %v1087_v3 = vld [vmem:[%s1524_s0 + $0x78] sm:$0xff]  ;;  %469 = vmatpush.bf16.msra.mxu3 %v1103_v2  ;;  %617 = vrot.lane.b32.xlu2 %v1094_v4, %s1132_s18  ;;  %v1078_v7 = vld [vmem:[%s1524_s0 + $0x30] sm:$0xff]  ;;  %v1092_v11 = vld [vmem:[%s1524_s0 + $0xa0] sm:$0xff] }
   0x5   :  { %411 = vmatpush.bf16.msra.mxu1 %v1087_v3  ;;  %v1100_v12 = vld [vmem:[%s1524_s0 + $0xe0] sm:$0xff]  ;;  %v1085_v13 = vld [vmem:[%s1524_s0 + $0x68] sm:$0xff]  ;;  %v1091_v14 = vld [vmem:[%s1524_s0 + $0x98] sm:$0xff] }
   0x6   :  { %441 = vmatpush.bf16.msra.mxu2 %v1094_v4  ;;  %v1084_v15 = vld [vmem:[%s1524_s0 + $0x60] sm:$0xff]  ;;  %v1083_v16 = vld [vmem:[%s1524_s0 + $0x58] sm:$0xff]  ;;  %v1074_v19 = vld [vmem:[%s1524_s0 + $0x10] sm:$0xff] }
   0x7   :  { %383 = vmatpush.bf16.msra.mxu0 %v1078_v7  ;;  %v1076_v17 = vld [vmem:[%s1524_s0 + $0x20] sm:$0xff]  ;;  %v1075_v18 = vld [vmem:[%s1524_s0 + $0x18] sm:$0xff]  ;;  %v1098_v21 = vld [vmem:[%s1524_s0 + $0xd0] sm:$0xff] }
   0x8   :  { %470 = vmatpush.bf16.msra.mxu3 %v1102_v5  ;;  %v1099_v20 = vld [vmem:[%s1524_s0 + $0xd8] sm:$0xff]  ;;  %v1097_v22 = vld [vmem:[%s1524_s0 + $0xc8] sm:$0xff]  ;;  %v1090_v23 = vld [vmem:[%s1524_s0 + $0x90] sm:$0xff] }
   0x9   :  { %412 = vmatpush.bf16.msra.mxu1 %v1086_v6  ;;  %v1089_v24 = vld [vmem:[%s1524_s0 + $0x88] sm:$0xff]  ;;  %v1088_v25 = vld [vmem:[%s1524_s0 + $0x80] sm:$0xff]  ;;  %v1082_v26 = vld [vmem:[%s1524_s0 + $0x50] sm:$0xff] }
   0xa   :  { %635 = vrot.lane.b32.xlu0 %v1103_v2, %s1132_s18  ;;  %442 = vmatpush.bf16.msra.mxu2 %v1093_v9  ;;  %v1081_v27 = vld [vmem:[%s1524_s0 + $0x48] sm:$0xff]  ;;  %v1096_v29 = vld [vmem:[%s1524_s0 + $0xc0] sm:$0xff]  ;;  %v1059_v31 = vld [vmem:[%s1525_s1 + $0x14] sm:$0xf0] }
   0xb   :  { %603 = vrot.lane.b32.xlu1 %v1087_v3, %s1132_s18  ;;  %384 = vmatpush.bf16.msra.mxu0 %v1077_v10  ;;  %v1073_v28 = vld [vmem:[%s1524_s0 + $0x8] sm:$0xff]  ;;  %v874_v34 = vld [vmem:[%s1525_s1 + $0x18] sm:$0xf0]  ;;  %v864_v35 = vld [vmem:[%s1525_s1] sm:$0xf] }
   0xc   :  { %471 = vmatpush.bf16.msra.mxu3 %v1101_v8  ;;  %633 = vrot.lane.b32.xlu2 %v1102_v5, %s1132_s18  ;;  %v872_v30 = vld [vmem:[%s1525_s1 + $0x8] sm:$0xf]  ;;  %v1057_v32 = vld [vmem:[%s1525_s1 + $0xc] sm:$0xf]  ;;  %v1058_v36 = vld [vmem:[%s1525_s1 + $0xc] sm:$0xf0] }
   0xd   :  { %413 = vmatpush.bf16.msra.mxu1 %v1085_v13  ;;  %v1272_v33 = vor.u32 %v1059_v31, %v872_v30  ;;  %v1284_v37 = vor.u32 %v1057_v32, %v874_v34  ;;  %v1056_v38 = vld [vmem:[%s1525_s1 + $0x4] sm:$0xf]  ;;  %v866_v39 = vld [vmem:[%s1525_s1 + $0x10] sm:$0xf0]  ;;  %v1299_v42 = vor.u32 %v1058_v36, %v864_v35  ;;  %v888_v44 = vld [vmem:[%s1525_s1 + $0x28] sm:$0xf] }
   0xe   :  { %443 = vmatpush.bf16.msra.mxu2 %v1092_v11  ;;  %v1080_v40 = vld [vmem:[%s1524_s0 + $0x40] sm:$0xff]  ;;  %v1301_v43 = vor.u32 %v1056_v38, %v866_v39  ;;  %v1063_v45 = vld [vmem:[%s1525_s1 + $0x34] sm:$0xf0]  ;;  %v1061_v47 = vld [vmem:[%s1525_s1 + $0x2c] sm:$0xf] }
   0xf   :  { %385 = vmatpush.bf16.msra.mxu0 %v1076_v17  ;;  %v1072_v41 = vld [vmem:[%s1524_s0] sm:$0xff]  ;;  %v1317_v46 = vor.u32 %v1063_v45, %v888_v44  ;;  %v890_v48 = vld [vmem:[%s1525_s1 + $0x38] sm:$0xf0]  ;;  %v1062_v51 = vld [vmem:[%s1525_s1 + $0x2c] sm:$0xf0] }
  0x10   :  { %472 = vmatpush.bf16.msra.mxu3 %v1100_v12  ;;  %v1330_v49 = vor.u32 %v1061_v47, %v890_v48  ;;  %v880_v50 = vld [vmem:[%s1525_s1 + $0x20] sm:$0xf]  ;;  %v1060_v52 = vld [vmem:[%s1525_s1 + $0x24] sm:$0xf]  ;;  %v882_v54 = vld [vmem:[%s1525_s1 + $0x30] sm:$0xf0] }
  0x11   :  { %414 = vmatpush.bf16.msra.mxu1 %v1084_v15  ;;  %v1342_v53 = vor.u32 %v1062_v51, %v880_v50  ;;  %v1347_v55 = vor.u32 %v1060_v52, %v882_v54  ;;  %v904_v56 = vld [vmem:[%s1525_s1 + $0x48] sm:$0xf]  ;;  %v1067_v57 = vld [vmem:[%s1525_s1 + $0x54] sm:$0xf0]  ;;  %v1065_v59 = vld [vmem:[%s1525_s1 + $0x4c] sm:$0xf] }
  0x12   :  { %585 = vrot.lane.b32.xlu0 %v1078_v7, %s1132_s18  ;;  %444 = vmatpush.bf16.msra.mxu2 %v1091_v14  ;;  %v1359_v58 = vor.u32 %v1067_v57, %v904_v56  ;;  %v906_v60 = vld [vmem:[%s1525_s1 + $0x58] sm:$0xf0]  ;;  %v896_v63 = vld [vmem:[%s1525_s1 + $0x40] sm:$0xf]  ;;  %v1066_v0 = vld [vmem:[%s1525_s1 + $0x4c] sm:$0xf0] }
  0x13   :  { %601 = vrot.lane.b32.xlu1 %v1086_v6, %s1132_s18  ;;  %386 = vmatpush.bf16.msra.mxu0 %v1075_v18  ;;  %v1368_v61 = vor.u32 %v1065_v59, %v906_v60  ;;  %v1064_v1 = vld [vmem:[%s1525_s1 + $0x44] sm:$0xf]  ;;  %v1380_v2 = vor.u32 %v1066_v0, %v896_v63  ;;  %v898_v3 = vld [vmem:[%s1525_s1 + $0x50] sm:$0xf0]  ;;  %v920_v6 = vld [vmem:[%s1525_s1 + $0x68] sm:$0xf] }
  0x14   :  { %615 = vrot.lane.b32.xlu2 %v1093_v9, %s1132_s18  ;;  %473 = vmatpush.bf16.msra.mxu3 %v1099_v20  ;;  %v1385_v4 = vor.u32 %v1064_v1, %v898_v3  ;;  %v1071_v7 = vld [vmem:[%s1525_s1 + $0x74] sm:$0xf0]  ;;  %v1069_v9 = vld [vmem:[%s1525_s1 + $0x6c] sm:$0xf] }
  0x15   :  { %415 = vmatpush.bf16.msra.mxu1 %v1083_v16 }
  0x16   :  { %445 = vmatpush.bf16.msra.mxu2 %v1090_v23 }
  0x17   :  { %387 = vmatpush.bf16.msra.mxu0 %v1074_v19 }
  0x18   :  { %474 = vmatpush.bf16.msra.mxu3 %v1098_v21 }
  0x19   :  { %416 = vmatpush.bf16.msra.mxu1 %v1082_v26 }
  0x1a   :  { %631 = vrot.lane.b32.xlu0 %v1101_v8, %s1132_s18  ;;  %446 = vmatpush.bf16.msra.mxu2 %v1089_v24  ;;  %v1395_v8 = vor.u32 %v1071_v7, %v920_v6 }
  0x1b   :  { %583 = vrot.lane.b32.xlu1 %v1077_v10, %s1132_s18  ;;  %388 = vmatpush.bf16.msra.mxu0 %v1073_v28  ;;  %v922_v10 = vld [vmem:[%s1525_s1 + $0x78] sm:$0xf0] }
  0x1c   :  { %599 = vrot.lane.b32.xlu2 %v1085_v13, %s1132_s18  ;;  %475 = vmatpush.bf16.msra.mxu3 %v1097_v22  ;;  %v1068_v13 = vld [vmem:[%s1525_s1 + $0x64] sm:$0xf] }
  0x1d   :  { %417 = vmatpush.bf16.msra.mxu1 %v1081_v27 }
  0x1e   :  { %447 = vmatpush.bf16.msra.mxu2 %v1088_v25 }
  0x1f   :  { %389 = vmatpush.bf16.msra.mxu0 %v1072_v41 }
  0x20   :  { %476 = vmatpush.bf16.msra.mxu3 %v1096_v29 }
  0x21   :  { %448 = vmatmul.bf16.vlgmr.msra.gmra.mxu2 %v1272_v33  ;;  %418 = vmatpush.bf16.msra.mxu1 %v1080_v40 }
  0x22   :  { %613 = vrot.lane.b32.xlu0 %v1092_v11, %s1132_s18  ;;  %390 = vmatmul.bf16.vlgmr.msra.gmra.mxu0 %v1299_v42  ;;  %v1404_v11 = vor.u32 %v1069_v9, %v922_v10 }
  0x23   :  { %629 = vrot.lane.b32.xlu1 %v1100_v12, %s1132_s18  ;;  %477 = vmatmul.bf16.vlgmr.msra.gmra.mxu3 %v1284_v37 }
  0x24   :  { %581 = vrot.lane.b32.xlu2 %v1076_v17, %s1132_s18  ;;  %419 = vmatmul.bf16.vlgmr.msra.gmra.mxu1 %v1301_v43  ;;  %v1070_v17 = vld [vmem:[%s1525_s1 + $0x6c] sm:$0xf0] }
  0x2a   :  { %597 = vrot.lane.b32.xlu0 %v1084_v15, %s1132_s18  ;;  %v912_v15 = vld [vmem:[%s1525_s1 + $0x60] sm:$0xf] }
  0x2b   :  { %611 = vrot.lane.b32.xlu1 %v1091_v14, %s1132_s18  ;;  %v914_v14 = vld [vmem:[%s1525_s1 + $0x70] sm:$0xf0] }
  0x2c   :  { %627 = vrot.lane.b32.xlu2 %v1099_v20, %s1132_s18 }
  0x31   :  { %453 = vmatmul.bf16.gmra.mxu2 %v1317_v46 }
  0x32   :  { %579 = vrot.lane.b32.xlu0 %v1075_v18, %s1132_s18  ;;  %395 = vmatmul.bf16.gmra.mxu0 %v1342_v53  ;;  %v1421_v18 = vor.u32 %v1070_v17, %v912_v15 }
  0x33   :  { %595 = vrot.lane.b32.xlu1 %v1083_v16, %s1132_s18  ;;  %482 = vmatmul.bf16.gmra.mxu3 %v1330_v49  ;;  %v1416_v16 = vor.u32 %v1068_v13, %v914_v14 }
  0x34   :  { %609 = vrot.lane.b32.xlu2 %v1090_v23, %s1132_s18  ;;  %424 = vmatmul.bf16.gmra.mxu1 %v1347_v55 }
  0x3a   :  { %625 = vrot.lane.b32.xlu0 %v1098_v21, %s1132_s18 }
  0x3b   :  { %577 = vrot.lane.b32.xlu1 %v1074_v19, %s1132_s18 }
  0x3c   :  { %593 = vrot.lane.b32.xlu2 %v1082_v26, %s1132_s18 }
  0x41   :  { %458 = vmatmul.bf16.gmra.mxu2 %v1359_v58 }
  0x42   :  { %607 = vrot.lane.b32.xlu0 %v1089_v24, %s1132_s18  ;;  %400 = vmatmul.bf16.gmra.mxu0 %v1380_v2 }
  0x43   :  { %623 = vrot.lane.b32.xlu1 %v1097_v22, %s1132_s18  ;;  %487 = vmatmul.bf16.gmra.mxu3 %v1368_v61 }
  0x44   :  { %575 = vrot.lane.b32.xlu2 %v1073_v28, %s1132_s18  ;;  %429 = vmatmul.bf16.gmra.mxu1 %v1385_v4 }
  0x4a   :  { %591 = vrot.lane.b32.xlu0 %v1081_v27, %s1132_s18 }
  0x4b   :  { %605 = vrot.lane.b32.xlu1 %v1088_v25, %s1132_s18 }
  0x4c   :  { %621 = vrot.lane.b32.xlu2 %v1096_v29, %s1132_s18 }
  0x51   :  { %463 = vmatmul.bf16.gmra.mxu2 %v1395_v8 }
  0x52   :  { %573 = vrot.lane.b32.xlu0 %v1072_v41, %s1132_s18  ;;  %405 = vmatmul.bf16.gmra.mxu0 %v1421_v18 }
  0x53   :  { %589 = vrot.lane.b32.xlu1 %v1080_v40, %s1132_s18  ;;  %492 = vmatmul.bf16.gmra.mxu3 %v1404_v11 }
  0x54   :  { %434 = vmatmul.bf16.gmra.mxu1 %v1416_v16 }
  0x5e   :  { %v618_v62 = vpop.permute.xlu2 %617 }
  0x66   :  { %v634_v5 = vpop.permute.xlu2 %633 }
  0x6e   :  { %v616_v12 = vpop.permute.xlu2 %615 }
  0x74   :  { %v620_v19 = vpop.permute.xlu0 %619 }
  0x75   :  { %v588_v20 = vpop.permute.xlu1 %587  ;;  %727 = vmatpush.bf16.msrb.mxu2 %v620_v19 }
  0x76   :  { %669 = vmatpush.bf16.msrb.mxu0 %v588_v20  ;;  %v600_v21 = vpop.permute.xlu2 %599  ;;  %v1441_v20 = vld [vmem:[%s1526_s2 + $0x8] sm:$0xff]  }
  0x79   :  { %728 = vmatpush.bf16.msrb.mxu2 %v618_v62 }
  0x7c   :  { %v636_v22 = vpop.permute.xlu0 %635 }
  0x7d   :  { %v604_v23 = vpop.permute.xlu1 %603  ;;  %756 = vmatpush.bf16.msrb.mxu3 %v636_v22  ;;  %729 = vmatpush.bf16.msrb.mxu2 %v616_v12 }
  0x7e   :  { %698 = vmatpush.bf16.msrb.mxu1 %v604_v23  ;;  %v582_v24 = vpop.permute.xlu2 %581 }
  0x81   :  { %757 = vmatpush.bf16.msrb.mxu3 %v634_v5 }
  0x84   :  { %v586_v26 = vpop.permute.xlu0 %585 }
  0x85   :  { %v602_v25 = vpop.permute.xlu1 %601  ;;  %670 = vmatpush.bf16.msrb.mxu0 %v586_v26 }
  0x86   :  { %699 = vmatpush.bf16.msrb.mxu1 %v602_v25  ;;  %v628_v29 = vpop.permute.xlu2 %627 }
  0x8a   :  { %700 = vmatpush.bf16.msrb.mxu1 %v600_v21 }
  0x8c   :  { %v632_v27 = vpop.permute.xlu0 %631 }
  0x8d   :  { %v584_v28 = vpop.permute.xlu1 %583  ;;  %758 = vmatpush.bf16.msrb.mxu3 %v632_v27 }
  0x8e   :  { %671 = vmatpush.bf16.msrb.mxu0 %v584_v28  ;;  %v610_v32 = vpop.permute.xlu2 %609  ;;  %v1110_v28 = vunpack.c.l.bf16 %v1441_v20 }
  0x92   :  { %672 = vmatpush.bf16.msrb.mxu0 %v582_v24 }
  0x94   :  { %v614_v30 = vpop.permute.xlu0 %613 }
  0x95   :  { %v630_v31 = vpop.permute.xlu1 %629  ;;  %730 = vmatpush.bf16.msrb.mxu2 %v614_v30 }
  0x96   :  { %759 = vmatpush.bf16.msrb.mxu3 %v630_v31  ;;  %v594_v36 = vpop.permute.xlu2 %593 }
  0x9a   :  { %760 = vmatpush.bf16.msrb.mxu3 %v628_v29 }
  0x9c   :  { %v598_v34 = vpop.permute.xlu0 %597 }
  0x9d   :  { %v612_v35 = vpop.permute.xlu1 %611  ;;  %701 = vmatpush.bf16.msrb.mxu1 %v598_v34 }
  0x9e   :  { %731 = vmatpush.bf16.msrb.mxu2 %v612_v35  ;;  %v576_v40 = vpop.permute.xlu2 %575 }
  0x9f   :  { %v391_v52 = vpop.f32.mrf.mxu0 }
  0xa1   :  { %v420_v54 = vpop.f32.mrf.mxu1 }
  0xa2   :  { %732 = vmatpush.bf16.msrb.mxu2 %v610_v32  ;;  %v421_v1 = vadd.f32 %v420_v54, %v391_v52  ;;  %v1111_v32 = vunpack.c.h.bf16 %v1441_v20 }
  0xa4   :  { %v580_v39 = vpop.permute.xlu0 %579  ;;  %v449_v56 = vpop.f32.mrf.mxu2 }
  0xa5   :  { %v596_v38 = vpop.permute.xlu1 %595  ;;  %673 = vmatpush.bf16.msrb.mxu0 %v580_v39  ;;  %v450_v5 = vadd.f32 %v449_v56, %v421_v1 }
  0xa6   :  { %702 = vmatpush.bf16.msrb.mxu1 %v596_v38  ;;  %v622_v48 = vpop.permute.xlu2 %621  ;;  %v478_v57 = vpop.f32.mrf.mxu3 }
  0xa7   :  { %v393_v62 = vpop.f32.mrf.mxu0  ;;  %v479_v12 = vadd.f32 %v478_v57, %v450_v5 }
  0xa9   :  { %v422_v63 = vpop.f32.mrf.mxu1 }
  0xaa   :  { %703 = vmatpush.bf16.msrb.mxu1 %v594_v36  ;;  %v423_v3 = vadd.f32 %v422_v63, %v393_v62 }
  0xac   :  { %v626_v41 = vpop.permute.xlu0 %625  ;;  %v451_v0 = vpop.f32.mrf.mxu2 }
  0xad   :  { %v578_v44 = vpop.permute.xlu1 %577  ;;  %761 = vmatpush.bf16.msrb.mxu3 %v626_v41  ;;  %v1462_v41 = vld [vmem:[%s1526_s2 + $0x10] sm:$0xff]  }
  0xae   :  { %674 = vmatpush.bf16.msrb.mxu0 %v578_v44 }
  0xaf   :  { %v396_v6 = vpop.f32.mrf.mxu0 }
  0xb1   :  { %v425_v7 = vpop.f32.mrf.mxu1 }
  0xb2   :  { %675 = vmatpush.bf16.msrb.mxu0 %v576_v40  ;;  %v426_v9 = vadd.f32 %v425_v7, %v396_v6  ;;  %v1480_v6 = vld [vmem:[%s1526_s2 + $0x18] sm:$0xff]  }
  0xb4   :  { %v608_v45 = vpop.permute.xlu0 %607  ;;  %v454_v10 = vpop.f32.mrf.mxu2 }
  0xb5   :  { %v624_v47 = vpop.permute.xlu1 %623  ;;  %733 = vmatpush.bf16.msrb.mxu2 %v608_v45  ;;  %v455_v14 = vadd.f32 %v454_v10, %v426_v9 }
  0xb6   :  { %762 = vmatpush.bf16.msrb.mxu3 %v624_v47 }
  0xb9   :  { %v427_v19 = vpop.f32.mrf.mxu1 }
  0xba   :  { %763 = vmatpush.bf16.msrb.mxu3 %v622_v48 }
  0xbc   :  { %v592_v50 = vpop.permute.xlu0 %591  ;;  %v456_v22 = vpop.f32.mrf.mxu2 }
  0xbd   :  { %v606_v51 = vpop.permute.xlu1 %605  ;;  %764 = vmatmul.bf16.vlgmr.msrb.gmra.mxu3 %v1284_v37  ;;  %704 = vmatpush.bf16.msrb.mxu1 %v592_v50  ;;  %v480_v37 = vpop.f32.mrf.mxu3  ;;  %v1114_v50 = vunpack.c.l.bf16 %v1462_v41 }
  0xbe   :  { %734 = vmatpush.bf16.msrb.mxu2 %v606_v51 }
  0xc1   :  { %735 = vmatmul.bf16.vlgmr.msrb.gmra.mxu2 %v1272_v33  ;;  %v452_v33 = vadd.f32 %v451_v0, %v423_v3  ;;  %v430_v38 = vpop.f32.mrf.mxu1 }
  0xc3   :  { %v481_v13 = vadd.f32 %v480_v37, %v452_v33  ;;  %v1115_v37 = vunpack.c.h.bf16 %v1462_v41 }
  0xc4   :  { %v574_v60 = vpop.permute.xlu0 %573  ;;  %v459_v40 = vpop.f32.mrf.mxu2 }
  0xc5   :  { %v590_v59 = vpop.permute.xlu1 %589  ;;  %676 = vmatpush.bf16.msrb.mxu0 %v574_v60  ;;  %v499_v17 = vmax.f32 %v481_v13, 0.0 }
  0xc6   :  { %705 = vmatpush.bf16.msrb.mxu1 %v590_v59 }
  0xc8   :  { %677 = vmatmul.bf16.vlgmr.msrb.gmra.mxu0 %v1299_v42  ;;  %v483_v42 = vpop.f32.mrf.mxu3 }
  0xc9   :  { %706 = vmatmul.bf16.vlgmr.msrb.gmra.mxu1 %v1301_v43  ;;  %v484_v15 = vadd.f32 %v483_v42, %v455_v14  ;;  %v498_v43 = vmax.f32 %v479_v12, 0.0  ;;  %v432_v54 = vpop.f32.mrf.mxu1 }
  0xcb   :  { %v500_v24 = vmax.f32 %v484_v15, 0.0 }
  0xcc   :  { %v461_v57 = vpop.f32.mrf.mxu2 }
  0xcd   :  { %769 = vmatmul.bf16.gmra.mxu3 %v1330_v49  ;;  %v398_v49 = vpop.f32.mrf.mxu0  ;;  %v508_v35 = vmul.f32 %v1110_v28, %v500_v24 }
  0xce   :  { %v428_v21 = vadd.f32 %v427_v19, %v398_v49 }
  0xcf   :  { %v521_v47 = vsel %vm514_vm0, %v508_v35, 0.0 }
  0xd0   :  { %v485_v25 = vpop.f32.mrf.mxu3 }
  0xd1   :  { %740 = vmatmul.bf16.gmra.mxu2 %v1317_v46  ;;  %v1436_v46 = vld [vmem:[%s1526_s2] sm:$0xff]  }
  0xd2   :  { %v1106_v23 = vunpack.c.l.bf16 %v1436_v46 }
  0xd4   :  { %v506_v26 = vmul.f32 %v1106_v23, %v498_v43  ;;  %v464_v5 = vpop.f32.mrf.mxu2 }
  0xd5   :  { %v401_v36 = vpop.f32.mrf.mxu0 }
  0xd6   :  { %v515_v30 = vsel %vm514_vm0, %v506_v26, 0.0  ;;  %v431_v39 = vadd.f32 %v430_v38, %v401_v36 }
  0xd7   :  { %516 = vadd.xlane.f32.xlu2 %v515_v30 }
  0xd8   :  { %682 = vmatmul.bf16.gmra.mxu0 %v1342_v53  ;;  %v1107_v53 = vunpack.c.h.bf16 %v1436_v46  ;;  %v460_v44 = vadd.f32 %v459_v40, %v431_v39  ;;  %v488_v45 = vpop.f32.mrf.mxu3 }
  0xd9   :  { %711 = vmatmul.bf16.gmra.mxu1 %v1347_v55  ;;  %v457_v55 = vadd.f32 %v456_v22, %v428_v21 }
  0xda   :  { %v507_v27 = vmul.f32 %v1107_v53, %v499_v17 }
  0xdb   :  { %v486_v29 = vadd.f32 %v485_v25, %v457_v55 }
  0xdc   :  { %v518_v31 = vsel %vm514_vm0, %v507_v27, 0.0  ;;  %v466_v15 = vpop.f32.mrf.mxu2 }
  0xdd   :  { %774 = vmatmul.bf16.gmra.mxu3 %v1368_v61  ;;  %519 = vadd.xlane.f32.xlu0 %v518_v31  ;;  %v501_v34 = vmax.f32 %v486_v29, 0.0  ;;  %v403_v52 = vpop.f32.mrf.mxu0 }
  0xde   :  { %v433_v56 = vadd.f32 %v432_v54, %v403_v52 }
  0xdf   :  { %v509_v61 = vmul.f32 %v1111_v32, %v501_v34  ;;  %522 = vadd.xlane.f32.xlu2 %v521_v47 }
  0xe0   :  { %v462_v60 = vadd.f32 %v461_v57, %v433_v56  ;;  %v490_v62 = vpop.f32.mrf.mxu3 }
  0xe1   :  { %745 = vmatmul.bf16.gmra.mxu2 %v1359_v58  ;;  %v524_v48 = vsel %vm514_vm0, %v509_v61, 0.0  ;;  %v489_v58 = vadd.f32 %v488_v45, %v460_v44 }
  0xe2   :  { %525 = vadd.xlane.f32.xlu1 %v524_v48  ;;  %v491_v0 = vadd.f32 %v490_v62, %v462_v60 }
  0xe3   :  { %v502_v51 = vmax.f32 %v489_v58, 0.0 }
  0xe5   :  { %v510_v59 = vmul.f32 %v1114_v50, %v502_v51  ;;  %v406_v1 = vpop.f32.mrf.mxu0 }
  0xe7   :  { %v527_v63 = vsel %vm514_vm0, %v510_v59, 0.0 }
  0xe8   :  { %687 = vmatmul.bf16.gmra.mxu0 %v1380_v2  ;;  %528 = vadd.xlane.f32.xlu0 %v527_v63  ;;  %v503_v2 = vmax.f32 %v491_v0, 0.0  ;;  %v493_v7 = vpop.f32.mrf.mxu3 }
  0xe9   :  { %716 = vmatmul.bf16.gmra.mxu1 %v1385_v4  ;;  %v435_v4 = vpop.f32.mrf.mxu1 }
  0xea   :  { %v436_v3 = vadd.f32 %v435_v4, %v406_v1  ;;  %v511_v33 = vmul.f32 %v1115_v37, %v503_v2 }
  0xec   :  { %v530_v9 = vsel %vm514_vm0, %v511_v33, 0.0 }
  0xed   :  { %779 = vmatmul.bf16.gmra.mxu3 %v1404_v11  ;;  %v465_v11 = vadd.f32 %v464_v5, %v436_v3  ;;  %531 = vadd.xlane.f32.xlu2 %v530_v9  ;;  %v408_v43 = vpop.f32.mrf.mxu0 }
  0xef   :  { %v494_v10 = vadd.f32 %v493_v7, %v465_v11 }
  0xf0   :  { %v1489_v42 = vpop.f32.mrf.mxu3 }
  0xf1   :  { %750 = vmatmul.bf16.gmra.mxu2 %v1395_v8  ;;  %v1118_v8 = vunpack.c.l.bf16 %v1480_v6  ;;  %v504_v12 = vmax.f32 %v494_v10, 0.0  ;;  %v437_v17 = vpop.f32.mrf.mxu1 }
  0xf2   :  { %v438_v9 = vadd.f32 %v437_v17, %v408_v43 }
  0xf3   :  { %v512_v13 = vmul.f32 %v1118_v8, %v504_v12 }
  0xf5   :  { %v533_v14 = vsel %vm514_vm0, %v512_v13, 0.0 }
  0xf6   :  { %534 = vadd.xlane.f32.xlu1 %v533_v14 }
  0xf8   :  { %692 = vmatmul.bf16.gmra.mxu0 %v1421_v18 }
  0xf9   :  { %721 = vmatmul.bf16.gmra.mxu1 %v1416_v16 }
 0x140   :  { %v765_v49 = vpop.f32.mrf.mxu3 }
 0x144   :  { %v736_v19 = vpop.f32.mrf.mxu2 }
 0x145   :  { %v678_v21 = vpop.f32.mrf.mxu0 }
 0x146   :  { %v707_v22 = vpop.f32.mrf.mxu1 }
 0x147   :  { %v708_v24 = vadd.f32 %v707_v22, %v678_v21  ;;  %v467_v21 = vadd.f32 %v466_v15, %v438_v9  ;;  %v1119_v15 = vunpack.c.h.bf16 %v1480_v6 }
 0x148   :  { %v767_v55 = vpop.f32.mrf.mxu3 }
 0x149   :  { %v737_v18 = vadd.f32 %v736_v19, %v708_v24  ;;  %v496_v24 = vadd.f32 %v1489_v42, %v467_v21 }
 0x14b   :  { %v766_v25 = vadd.f32 %v765_v49, %v737_v18 }
 0x14c   :  { %v738_v16 = vpop.f32.mrf.mxu2 }
 0x14d   :  { %v785_v26 = vmax.f32 %v766_v25, 0.0  ;;  %v680_v27 = vpop.f32.mrf.mxu0 }
 0x14e   :  { %v709_v29 = vpop.f32.mrf.mxu1 }
 0x14f   :  { %v710_v30 = vadd.f32 %v709_v29, %v680_v27  ;;  %v793_v31 = vmul.f32 %v1106_v23, %v785_v26  ;;  %v505_v27 = vmax.f32 %v496_v24, 0.0 }
 0x150   :  { %v770_v34 = vpop.f32.mrf.mxu3 }
 0x151   :  { %v739_v35 = vadd.f32 %v738_v16, %v710_v30  ;;  %v801_v36 = vsel %vm514_vm0, %v793_v31, 0.0 }
 0x152   :  { %802 = vadd.xlane.f32.xlu1 %v801_v36 }
 0x153   :  { %v768_v38 = vadd.f32 %v767_v55, %v739_v35 }
 0x154   :  { %v741_v39 = vpop.f32.mrf.mxu2 }
 0x155   :  { %v786_v40 = vmax.f32 %v768_v38, 0.0  ;;  %v683_v61 = vpop.f32.mrf.mxu0  ;;  %v526_v6 = vpop.xlane.xlu1 %525 }
 0x156   :  { %v712_v44 = vpop.f32.mrf.mxu1 }
 0x157   :  { %v713_v45 = vadd.f32 %v712_v44, %v683_v61  ;;  %v794_v47 = vmul.f32 %v1107_v53, %v786_v40 }
 0x158   :  { %v772_v51 = vpop.f32.mrf.mxu3 }
 0x159   :  { %v742_v48 = vadd.f32 %v741_v39, %v713_v45  ;;  %v804_v58 = vsel %vm514_vm0, %v794_v47, 0.0 }
 0x15a   :  { %805 = vadd.xlane.f32.xlu2 %v804_v58  ;;  %v517_v58 = vpop.xlane.xlu2 %516 }
 0x15b   :  { %v771_v23 = vadd.f32 %v770_v34, %v742_v48  ;;  %v513_v34 = vmul.f32 %v1119_v15, %v505_v27 }
 0x15c   :  { %v743_v52 = vpop.f32.mrf.mxu2 }
 0x15d   :  { %v787_v54 = vmax.f32 %v771_v23, 0.0  ;;  %v685_v56 = vpop.f32.mrf.mxu0  ;;  %v536_v40 = vsel %vm514_vm0, %v513_v34, 0.0 }
 0x15e   :  { %v714_v57 = vpop.f32.mrf.mxu1 }
 0x15f   :  { %v715_v59 = vadd.f32 %v714_v57, %v685_v56  ;;  %v795_v60 = vmul.f32 %v1110_v28, %v787_v54 }
 0x160   :  { %v775_v53 = vpop.f32.mrf.mxu3 }
 0x161   :  { %v744_v62 = vadd.f32 %v743_v52, %v715_v59  ;;  %v807_v63 = vsel %vm514_vm0, %v795_v60, 0.0 }
 0x162   :  { %808 = vadd.xlane.f32.xlu0 %v807_v63  ;;  %v523_v23 = vpop.xlane.xlu2 %522 }
 0x163   :  { %v773_v46 = vadd.f32 %v772_v51, %v744_v62  ;;  %v520_v51 = vpop.xlane.xlu0 %519 }
 0x164   :  { %v746_v0 = vpop.f32.mrf.mxu2  ;;  %v539_v52 = vadd.f32 %v520_v51, %v517_v58 }
 0x165   :  { %v788_v2 = vmax.f32 %v773_v46, 0.0  ;;  %v688_v4 = vpop.f32.mrf.mxu0 }
 0x166   :  { %v717_v1 = vpop.f32.mrf.mxu1  ;;  %v540_v56 = vadd.f32 %v539_v52, %v523_v23 }
 0x167   :  { %v718_v3 = vadd.f32 %v717_v1, %v688_v4  ;;  %v796_v5 = vmul.f32 %v1111_v32, %v788_v2 }
 0x168   :  { %v777_v12 = vpop.f32.mrf.mxu3  ;;  %v541_v60 = vadd.f32 %v540_v56, %v526_v6 }
 0x169   :  { %v747_v33 = vadd.f32 %v746_v0, %v718_v3  ;;  %v810_v11 = vsel %vm514_vm0, %v796_v5, 0.0  ;;  %v535_v57 = vpop.xlane.xlu1 %534 }
 0x16a   :  { %811 = vadd.xlane.f32.xlu2 %v810_v11  ;;  %v532_v54 = vpop.xlane.xlu2 %531 }
 0x16b   :  { %v776_v7 = vadd.f32 %v775_v53, %v747_v33 }
 0x16c   :  { %v748_v28 = vpop.f32.mrf.mxu2 }
 0x16d   :  { %v789_v10 = vmax.f32 %v776_v7, 0.0  ;;  %v690_v13 = vpop.f32.mrf.mxu0 }
 0x16e   :  { %v719_v14 = vpop.f32.mrf.mxu1 }
 0x16f   :  { %v720_v49 = vadd.f32 %v719_v14, %v690_v13  ;;  %v797_v19 = vmul.f32 %v1114_v50, %v789_v10 }
 0x170   :  { %v780_v26 = vpop.f32.mrf.mxu3 }
 0x171   :  { %v749_v22 = vadd.f32 %v748_v28, %v720_v49  ;;  %v813_v20 = vsel %vm514_vm0, %v797_v19, 0.0 }
 0x172   :  { %814 = vadd.xlane.f32.xlu1 %v813_v20 }
 0x173   :  { %v778_v32 = vadd.f32 %v777_v12, %v749_v22 }
 0x174   :  { %v751_v18 = vpop.f32.mrf.mxu2 }
 0x175   :  { %v790_v55 = vmax.f32 %v778_v32, 0.0  ;;  %v693_v25 = vpop.f32.mrf.mxu0 }
 0x176   :  { %v722_v43 = vpop.f32.mrf.mxu1 }
 0x177   :  { %v723_v17 = vadd.f32 %v722_v43, %v693_v25  ;;  %v798_v16 = vmul.f32 %v1115_v37, %v790_v55 }
 0x178   :  { %v782_v61 = vpop.f32.mrf.mxu3 }
 0x179   :  { %v752_v29 = vadd.f32 %v751_v18, %v723_v17  ;;  %v816_v50 = vsel %vm514_vm0, %v798_v16, 0.0 }
 0x17a   :  { %817 = vadd.xlane.f32.xlu0 %v816_v50 }
 0x17b   :  { %v781_v30 = vadd.f32 %v780_v26, %v752_v29 }
 0x17c   :  { %v753_v39 = vpop.f32.mrf.mxu2 }
 0x17d   :  { %v791_v31 = vmax.f32 %v781_v30, 0.0  ;;  %v695_v42 = vpop.f32.mrf.mxu0 }
 0x17e   :  { %v724_v35 = vpop.f32.mrf.mxu1 }
 0x17f   :  { %v725_v36 = vadd.f32 %v724_v35, %v695_v42  ;;  %v799_v38 = vmul.f32 %v1118_v8, %v791_v31  ;;  %v529_v8 = vpop.xlane.xlu0 %528 }
 0x180   :  { %v542_v63 = vadd.f32 %v541_v60, %v529_v8 }
 0x181   :  { %v754_v41 = vadd.f32 %v753_v39, %v725_v36  ;;  %v819_v37 = vsel %vm514_vm0, %v799_v38, 0.0 }
 0x182   :  { %820 = vadd.xlane.f32.xlu2 %v819_v37  ;;  %537 = vadd.xlane.f32.xlu0 %v536_v40  ;;  %v543_v0 = vadd.f32 %v542_v63, %v532_v54 }
 0x183   :  { %v783_v44 = vadd.f32 %v782_v61, %v754_v41 }
 0x184   :  { %v544_v1 = vadd.f32 %v543_v0, %v535_v57 }
 0x185   :  { %v792_v45 = vmax.f32 %v783_v44, 0.0 }
 0x187   :  { %v800_v47 = vmul.f32 %v1119_v15, %v792_v45 }
 0x189   :  { %v822_v48 = vsel %vm514_vm0, %v800_v47, 0.0 }
 0x18a   :  { %823 = vadd.xlane.f32.xlu1 %v822_v48 }
 0x1c5   :  { %v803_v46 = vpop.xlane.xlu1 %802 }
 0x1cd   :  { %v806_v62 = vpop.xlane.xlu2 %805 }
 0x1ce   :  { %v825_v4 = vadd.f32 %v806_v62, %v803_v46 }
 0x1d5   :  { %v809_v59 = vpop.xlane.xlu0 %808 }
 0x1d6   :  { %v826_v3 = vadd.f32 %v825_v4, %v809_v59 }
 0x1dd   :  { %v812_v2 = vpop.xlane.xlu2 %811 }
 0x1de   :  { %v827_v11 = vadd.f32 %v826_v3, %v812_v2 }
 0x1e5   :  { %v815_v5 = vpop.xlane.xlu1 %814 }
 0x1e6   :  { %v828_v28 = vadd.f32 %v827_v11, %v815_v5 }
 0x1ed   :  { %v818_v53 = vpop.xlane.xlu0 %817 }
 0x1ee   :  { %v829_v12 = vadd.f32 %v828_v28, %v818_v53 }
 0x1f5   :  { %v538_v33 = vpop.xlane.xlu0 %537  ;;  %v821_v10 = vpop.xlane.xlu2 %820 }
 0x1f6   :  { %v545_v7 = vadd.f32 %v544_v1, %v538_v33  ;;  %v830_v14 = vadd.f32 %v829_v12, %v821_v10 }
 0x1f8   :  { %v546_v9 = vrot.slane %v545_v7, 4 }
 0x1fa   :  { %v547_v13 = vadd.f32 %v546_v9, %v545_v7 }
 0x1fc   :  { %v548_v49 = vrot.slane %v547_v13, 2 }
 0x1fd   :  { %v824_v19 = vpop.xlane.xlu1 %823 }
 0x1fe   :  { %v549_v21 = vadd.f32 %v548_v49, %v547_v13  ;;  %v831_v22 = vadd.f32 %v830_v14, %v824_v19 }
 0x200   :  { %v550_v20 = vrot.slane %v549_v21, 1  ;;  %v832_v32 = vrot.slane %v831_v22, 4 }
 0x202   :  { %v551_v24 = vadd.f32 %v550_v20, %v549_v21  ;;  %v833_v55 = vadd.f32 %v832_v32, %v831_v22 }
 0x204   :  { %v1054_v18 = vmul.f32 -1.442695, %v551_v24  ;;  %v834_v25 = vrot.slane %v833_v55, 2 }
 0x206   :  { %1124 = vpow2.f32 %v1054_v18  ;;  %v835_v43 = vadd.f32 %v834_v25, %v833_v55 }
 0x208   :  { %v836_v17 = vrot.slane %v835_v43, 1 }
 0x20a   :  { %v837_v16 = vadd.f32 %v836_v17, %v835_v43 }
 0x20c   :  { %v1125_v26 = vpop.eup %1124  ;;  %v1055_v27 = vmul.f32 -1.442695, %v837_v16 }
 0x20d   :  { %v555_v29 = vadd.f32 1.0, %v1125_v26 }
 0x20e   :  { %1126 = vpow2.f32 %v1055_v27 }
 0x20f   :  { %1128 = vrcp.f32 %v555_v29  ;;  %v567_v42 = vand.u32 2147483648, %v555_v29  ;;  %v565_v36 = vand.u32 2147483647, %v555_v29  ;;  %vm561_vm2 = vweird.f32 %v555_v29 }
 0x211   :  { %v568_v41 = vor.u32 1.1754944e-38, %v567_v42  ;;  %vm566_vm5 = vcmp.eq.f32.partialorder %v565_v36, 8.507059e+37 }
 0x214   :  { %v1127_v50 = vpop.eup %1126 }
 0x215   :  { %v1129_v15 = vpop.eup %1128  ;;  %v841_v30 = vadd.f32 1.0, %v1127_v50 }
 0x216   :  { %v557_v31 = vmul.f32 %v1129_v15, %v555_v29  ;;  %vm562_vm1 = vweird.f32 %v1129_v15 }
 0x217   :  { %1130 = vrcp.f32 %v841_v30  ;;  %vm563_vm4 = vmor %vm561_vm2, %vm562_vm1  ;;  %v853_v45 = vand.u32 2147483648, %v841_v30  ;;  %v851_v48 = vand.u32 2147483647, %v841_v30  ;;  %vm847_vm7 = vweird.f32 %v841_v30 }
 0x218   :  { %v558_v34 = vsub.f32 1.0, %v557_v31 }
 0x219   :  { %v854_v51 = vor.u32 1.1754944e-38, %v853_v45  ;;  %vm852_vm9 = vcmp.eq.f32.partialorder %v851_v48, 8.507059e+37 }
 0x21a   :  { %v559_v35 = vmul.f32 %v1129_v15, %v558_v34 }
 0x21c   :  { %v560_v38 = vadd.f32 %v1129_v15, %v559_v35 }
 0x21d   :  { %v1131_v39 = vpop.eup %1130 }
 0x21e   :  { %v564_v37 = vsel %vm563_vm4, %v1129_v15, %v560_v38  ;;  %v843_v40 = vmul.f32 %v1131_v39, %v841_v30  ;;  %vm848_vm6 = vweird.f32 %v1131_v39 }
 0x21f   :  { %v569_v61 = vsel %vm566_vm5, %v568_v41, %v564_v37  ;;  %vm849_vm8 = vmor %vm847_vm7, %vm848_vm6 }
 0x220   :  { %572 = vst.msk [vmem:[%s1527_s3] sm:$0x1] %vm571_vm3, %v569_v61  ;;  %v844_v44 = vsub.f32 1.0, %v843_v40 }
 0x222   :  { %v845_v47 = vmul.f32 %v1131_v39, %v844_v44 }
 0x224   :  { %v846_v58 = vadd.f32 %v1131_v39, %v845_v47 }
 0x226   :  { %v850_v23 = vsel %vm849_vm8, %v1131_v39, %v846_v58 }
 0x227   :  { %v855_v6 = vsel %vm852_vm9, %v854_v51, %v850_v23 }
 0x228   :  { %857 = vst.msk [vmem:[%s1527_s3 + $0x1] sm:$0x1] %vm571_vm3, %v855_v6 }

</bundles_post_ra>
